<compile_context>
chip_gen: v7x
topology: tpu7x:2x2x1
jax: 0.10.0
libtpu: 0.0.40
codegen_flags: <defaults>
</compile_context>

<pallas_src>
import functools

import jax
import jax.numpy as jnp
from jax.experimental import pallas as pl
from jax.experimental.pallas import tpu as pltpu

EPS = 1e-5


# ---------------- Fused conv3x3 (+ optional fused BN/ReLU on input) + BN stats ----

def _fused_conv_kernel(H, W, apply_act, *refs):
    """One NHWC image per grid step: pad in VMEM, 9 shifted tap matmuls,
    BN batch-stats epilogue.  Optionally applies the previous layer's
    BN scale/shift + ReLU to the input tile first (fused apply)."""
    if apply_act:
        (x_ref, w_ref, scale_ref, shift_ref,
         y_ref, sum_ref, sq_ref, xp_scr) = refs
    else:
        x_ref, w_ref, y_ref, sum_ref, sq_ref, xp_scr = refs
        scale_ref = shift_ref = None

    cin = x_ref.shape[-1]
    cout = y_ref.shape[-1]

    # init the revisited (1, Cout) stats accumulators on the first grid step
    @pl.when(pl.program_id(0) == 0)
    def _():
        sum_ref[...] = jnp.zeros_like(sum_ref)
        sq_ref[...] = jnp.zeros_like(sq_ref)

    x = x_ref[0]                                           # (H, W, Cin)
    if apply_act:
        # fused BN-apply + ReLU of the previous layer (per-channel affine)
        x = jnp.maximum(x * scale_ref[...] + shift_ref[...], 0.0)

    # zero-padded tile lives only in VMEM (conv padding=1); halo never hits HBM
    xp_scr[...] = jnp.zeros(xp_scr.shape, xp_scr.dtype)
    xp_scr[1:H + 1, 1:W + 1, :] = x

    # nine shifted (H*W, Cin) @ (Cin, Cout) matmuls accumulated in f32 (MXU)
    acc = jnp.zeros((H * W, cout), jnp.float32)
    for dy in range(3):
        for dx in range(3):
            xs = xp_scr[dy:dy + H, dx:dx + W, :].reshape(H * W, cin)
            acc = acc + jnp.dot(xs, w_ref[dy, dx, :, :],
                                preferred_element_type=jnp.float32)

    # BN batch statistics as free epilogue filler (VPU/XLU under the MXU/DMA)
    sum_ref[...] += jnp.sum(acc, axis=0, keepdims=True)
    sq_ref[...] += jnp.sum(acc * acc, axis=0, keepdims=True)

    y_ref[0] = acc.reshape(H, W, cout)


def fused_conv3x3_bn_stats(x_nhwc, w_hwio, scale=None, shift=None):
    """3x3 same-conv (no bias; bias is cancelled by training-mode BN) over NHWC.
    If scale/shift are given, applies them + ReLU to the input inside the kernel.
    Returns pre-BN conv output y (N,H,W,Cout) and per-channel (sum, sum_sq)."""
    n, h, w, cin = x_nhwc.shape
    cout = w_hwio.shape[-1]
    apply_act = scale is not None

    in_specs = [
        pl.BlockSpec((1, h, w, cin), lambda i: (i, 0, 0, 0)),
        pl.BlockSpec((3, 3, cin, cout), lambda i: (0, 0, 0, 0)),  # resident
    ]
    args = [x_nhwc, w_hwio]
    if apply_act:
        in_specs += [pl.BlockSpec((1, cin), lambda i: (0, 0)),
                     pl.BlockSpec((1, cin), lambda i: (0, 0))]
        args += [scale.reshape(1, cin), shift.reshape(1, cin)]

    kernel = functools.partial(_fused_conv_kernel, h, w, apply_act)

    y, s, ss = pl.pallas_call(
        kernel,
        out_shape=(jax.ShapeDtypeStruct((n, h, w, cout), jnp.float32),
                   jax.ShapeDtypeStruct((1, cout), jnp.float32),
                   jax.ShapeDtypeStruct((1, cout), jnp.float32)),
        grid_spec=pltpu.PrefetchScalarGridSpec(
            num_scalar_prefetch=0,
            grid=(n,),
            in_specs=in_specs,
            out_specs=(pl.BlockSpec((1, h, w, cout), lambda i: (i, 0, 0, 0)),
                       pl.BlockSpec((1, cout), lambda i: (0, 0)),
                       pl.BlockSpec((1, cout), lambda i: (0, 0))),
            scratch_shapes=[pltpu.VMEM((h + 2, w + 2, cin), jnp.float32)],
        ),
        # stats accumulate across the grid -> axis must be "arbitrary"
        compiler_params=pltpu.CompilerParams(
            dimension_semantics=("arbitrary",)),
    )(*args)
    return y, s[0], ss[0]


# ---------------- Final BN-apply + ReLU (lane-dense) ----------------

def _bn_relu_kernel(y_ref, scale_ref, shift_ref, o_ref):
    o_ref[...] = jnp.maximum(y_ref[...] * scale_ref[...] + shift_ref[...], 0.0)


def bn_relu_apply(y_flat, scale, shift, tm=512):
    """y_flat: (M, C).  Packs p = 128 // C rows per vreg row so loads/stores are
    unmasked 128-lane accesses; scale/shift are tiled p times along lanes."""
    m, c = y_flat.shape
    if c < 128 and 128 % c == 0 and m % (128 // c) == 0:
        p = 128 // c
    else:
        p = 1  # TODO(synk): pad ragged M / C for non-toy shapes
    mp, cp = m // p, p * c
    yp = y_flat.reshape(mp, cp)                       # free row-major reshape
    sp = jnp.tile(scale, p).reshape(1, cp)
    bp = jnp.tile(shift, p).reshape(1, cp)
    tm = min(tm, mp)
    assert mp % tm == 0, (mp, tm)

    out = pl.pallas_call(
        _bn_relu_kernel,
        out_shape=jax.ShapeDtypeStruct((mp, cp), jnp.float32),
        grid_spec=pltpu.PrefetchScalarGridSpec(
            num_scalar_prefetch=0,
            grid=(mp // tm,),
            in_specs=[pl.BlockSpec((tm, cp), lambda i: (i, 0)),
                      pl.BlockSpec((1, cp), lambda i: (0, 0)),
                      pl.BlockSpec((1, cp), lambda i: (0, 0))],
            out_specs=pl.BlockSpec((tm, cp), lambda i: (i, 0)),
        ),
        compiler_params=pltpu.CompilerParams(
            dimension_semantics=("parallel",)),
    )(yp, sp, bp)
    return out.reshape(m, c)


# ---------------- Glue ----------------

def bn_scale_shift(s, ss, count, gamma, beta):
    # training-mode BatchNorm2d: batch mean / biased variance over (N, H, W)
    mean = s / count
    var = jnp.maximum(ss / count - mean * mean, 0.0)
    scale = gamma * jax.lax.rsqrt(var + EPS)
    shift = beta - mean * scale
    return scale, shift


def conv_block_forward(x_nchw, params):
    x = jnp.transpose(x_nchw, (0, 2, 3, 1))          # NCHW -> NHWC
    n, h, w, _ = x.shape
    cnt = float(n * h * w)

    w1 = jnp.transpose(params["w1"], (2, 3, 1, 0))   # OIHW -> HWIO
    w2 = jnp.transpose(params["w2"], (2, 3, 1, 0))

    # layer 1: conv (bias dropped -- cancelled by train-mode BN) + batch stats
    y1, s1, ss1 = fused_conv3x3_bn_stats(x, w1)
    sc1, sh1 = bn_scale_shift(s1, ss1, cnt, params["g1"], params["be1"])

    # layer 2: BN1-apply + ReLU fused into the conv's input path
    y2, s2, ss2 = fused_conv3x3_bn_stats(y1, w2, sc1, sh1)
    sc2, sh2 = bn_scale_shift(s2, ss2, cnt, params["g2"], params["be2"])

    cout = y2.shape[-1]
    a2 = bn_relu_apply(y2.reshape(n * h * w, cout), sc2, sh2)
    return jnp.transpose(a2.reshape(n, h, w, cout), (0, 3, 1, 2))  # -> NCHW


# ---------------- Pure-JAX reference (biased convs, two-pass BN) ----------------

def reference_forward(x_nchw, params):
    def conv(x, w, b):
        y = jax.lax.conv_general_dilated(
            x, w, window_strides=(1, 1), padding=((1, 1), (1, 1)),
            dimension_numbers=("NCHW", "OIHW", "NCHW"))
        return y + b[None, :, None, None]

    def bn_relu_ref(x, g, be):
        mean = jnp.mean(x, axis=(0, 2, 3), keepdims=True)
        var = jnp.mean((x - mean) ** 2, axis=(0, 2, 3), keepdims=True)
        xn = (x - mean) * jax.lax.rsqrt(var + EPS)
        return jnp.maximum(
            xn * g[None, :, None, None] + be[None, :, None, None], 0.0)

    x = conv(x_nchw, params["w1"], params["b1"])
    x = bn_relu_ref(x, params["g1"], params["be1"])
    x = conv(x, params["w2"], params["b2"])
    x = bn_relu_ref(x, params["g2"], params["be2"])
    return x


# ---------------- Main ----------------

if __name__ == "__main__":
    in_c, out_c = 4, 8
    N, H, W = 2, 16, 16

    key = jax.random.PRNGKey(0)
    ks = jax.random.split(key, 9)
    fan1 = in_c * 9
    fan2 = out_c * 9
    params = {
        "w1": jax.random.normal(ks[0], (out_c, in_c, 3, 3), jnp.float32) / jnp.sqrt(fan1),
        "b1": jax.random.normal(ks[1], (out_c,), jnp.float32) * 0.1,
        "g1": 1.0 + 0.1 * jax.random.normal(ks[2], (out_c,), jnp.float32),
        "be1": 0.1 * jax.random.normal(ks[3], (out_c,), jnp.float32),
        "w2": jax.random.normal(ks[4], (out_c, out_c, 3, 3), jnp.float32) / jnp.sqrt(fan2),
        "b2": jax.random.normal(ks[5], (out_c,), jnp.float32) * 0.1,
        "g2": 1.0 + 0.1 * jax.random.normal(ks[6], (out_c,), jnp.float32),
        "be2": 0.1 * jax.random.normal(ks[7], (out_c,), jnp.float32),
    }
    x = jax.random.normal(ks[8], (N, in_c, H, W), jnp.float32)

    out = jax.block_until_ready(conv_block_forward(x, params))
    ref = jax.block_until_ready(reference_forward(x, params))

    assert out.shape == (N, out_c, H, W), out.shape
    assert jnp.allclose(out, ref, atol=2e-3, rtol=2e-3), \
        float(jnp.max(jnp.abs(out - ref)))
    print("KERNEL_OK")
</pallas_src>

<mosaic_0001>
module attributes {stable_mosaic.version = 11 : i64} {
  func.func @_fused_conv_kernel(%arg0: i32, %arg1: memref<1x16x16x4xf32, #tpu.memory_space<vmem>>, %arg2: memref<3x3x4x8xf32, #tpu.memory_space<vmem>>, %arg3: memref<1x16x16x8xf32, #tpu.memory_space<vmem>>, %arg4: memref<1x8xf32, #tpu.memory_space<vmem>>, %arg5: memref<1x8xf32, #tpu.memory_space<vmem>>, %arg6: memref<18x18x4xf32, #tpu.memory_space<vmem>>) attributes {dimension_semantics = [#tpu.dimension_semantics<arbitrary>], iteration_bounds = array<i64: 2>, scalar_prefetch = 0 : i64, scratch_operands = 1 : i64, tpu.core_type = #tpu.core_type<tc>, window_params = [{transform_indices = @transform_0, window_bounds = array<i64: 1, 16, 16, 4>}, {pipeline_mode = #tpu.pipeline_mode<synchronous>, transform_indices = @transform_1, window_bounds = array<i64: 3, 3, 4, 8>}, {transform_indices = @transform_2, window_bounds = array<i64: 1, 16, 16, 8>}, {pipeline_mode = #tpu.pipeline_mode<synchronous>, transform_indices = @transform_3, window_bounds = array<i64: 1, 8>}, {pipeline_mode = #tpu.pipeline_mode<synchronous>, transform_indices = @transform_4, window_bounds = array<i64: 1, 8>}]} {
    %c0_i32 = arith.constant 0 : i32
    %0 = arith.cmpi eq, %arg0, %c0_i32 : i32
    %1 = arith.extui %0 : i1 to i32
    %c0_i32_0 = arith.constant 0 : i32
    %2 = arith.cmpi ne, %1, %c0_i32_0 : i32
    scf.if %2 {
      %cst_95 = arith.constant 0.000000e+00 : f32
      %78 = vector.broadcast %cst_95 : f32 to vector<1x8xf32>
      %c0_96 = arith.constant 0 : index
      %c0_97 = arith.constant 0 : index
      %79 = vector.load %arg4[%c0_96, %c0_97] : memref<1x8xf32, #tpu.memory_space<vmem>>, vector<1x8xf32>
      tpu.vector_store %arg4[%c0_96, %c0_97], %78 {strides = array<i32>} : memref<1x8xf32, #tpu.memory_space<vmem>>, vector<1x8xf32>,
      %cst_98 = arith.constant 0.000000e+00 : f32
      %80 = vector.broadcast %cst_98 : f32 to vector<1x8xf32>
      %c0_99 = arith.constant 0 : index
      %c0_100 = arith.constant 0 : index
      %81 = vector.load %arg5[%c0_99, %c0_100] : memref<1x8xf32, #tpu.memory_space<vmem>>, vector<1x8xf32>
      tpu.vector_store %arg5[%c0_99, %c0_100], %80 {strides = array<i32>} : memref<1x8xf32, #tpu.memory_space<vmem>>, vector<1x8xf32>,
    } else {
    }
    %c0 = arith.constant 0 : index
    %c0_1 = arith.constant 0 : index
    %c0_2 = arith.constant 0 : index
    %c0_3 = arith.constant 0 : index
    %3 = vector.load %arg1[%c0, %c0_1, %c0_2, %c0_3] : memref<1x16x16x4xf32, #tpu.memory_space<vmem>>, vector<1x16x16x4xf32>
    %4 = vector.shape_cast %3 : vector<1x16x16x4xf32> to vector<16x16x4xf32>
    %cst = arith.constant 0.000000e+00 : f32
    %5 = vector.broadcast %cst : f32 to vector<18x18x4xf32>
    %c0_4 = arith.constant 0 : index
    %c0_5 = arith.constant 0 : index
    %c0_6 = arith.constant 0 : index
    %6 = vector.load %arg6[%c0_4, %c0_5, %c0_6] : memref<18x18x4xf32, #tpu.memory_space<vmem>>, vector<18x18x4xf32>
    tpu.vector_store %arg6[%c0_4, %c0_5, %c0_6], %5 {strides = array<i32>} : memref<18x18x4xf32, #tpu.memory_space<vmem>>, vector<18x18x4xf32>,
    %c1 = arith.constant 1 : index
    %c1_7 = arith.constant 1 : index
    %c0_8 = arith.constant 0 : index
    %7 = vector.load %arg6[%c1, %c1_7, %c0_8] : memref<18x18x4xf32, #tpu.memory_space<vmem>>, vector<16x16x4xf32>
    tpu.vector_store %arg6[%c1, %c1_7, %c0_8], %4 {strides = array<i32>} : memref<18x18x4xf32, #tpu.memory_space<vmem>>, vector<16x16x4xf32>,
    %cst_9 = arith.constant 0.000000e+00 : f32
    %8 = vector.broadcast %cst_9 : f32 to vector<256x8xf32>
    %c0_10 = arith.constant 0 : index
    %c0_11 = arith.constant 0 : index
    %c0_12 = arith.constant 0 : index
    %9 = vector.load %arg6[%c0_10, %c0_11, %c0_12] : memref<18x18x4xf32, #tpu.memory_space<vmem>>, vector<16x16x4xf32>
    %10 = vector.shape_cast %9 : vector<16x16x4xf32> to vector<256x4xf32>
    %c0_13 = arith.constant 0 : index
    %c0_14 = arith.constant 0 : index
    %c0_15 = arith.constant 0 : index
    %c0_16 = arith.constant 0 : index
    %11 = vector.load %arg2[%c0_13, %c0_14, %c0_15, %c0_16] : memref<3x3x4x8xf32, #tpu.memory_space<vmem>>, vector<1x1x4x8xf32>
    %12 = vector.shape_cast %11 : vector<1x1x4x8xf32> to vector<4x8xf32>
    %cst_17 = arith.constant dense<0.000000e+00> : vector<256x8xf32>
    %13 = tpu.matmul %10, %12, %cst_17 {dimension_numbers = #tpu.dot_dimension_numbers<[1], [0], [0], [1], [0, 0, 1, 1], [], []>} : vector<256x4xf32>, vector<4x8xf32>, vector<256x8xf32> -> vector<256x8xf32>
    %14 = arith.addf %8, %13 : vector<256x8xf32>
    %c0_18 = arith.constant 0 : index
    %c1_19 = arith.constant 1 : index
    %c0_20 = arith.constant 0 : index
    %15 = vector.load %arg6[%c0_18, %c1_19, %c0_20] : memref<18x18x4xf32, #tpu.memory_space<vmem>>, vector<16x16x4xf32>
    %16 = vector.shape_cast %15 : vector<16x16x4xf32> to vector<256x4xf32>
    %c0_21 = arith.constant 0 : index
    %c1_22 = arith.constant 1 : index
    %c0_23 = arith.constant 0 : index
    %c0_24 = arith.constant 0 : index
    %17 = vector.load %arg2[%c0_21, %c1_22, %c0_23, %c0_24] : memref<3x3x4x8xf32, #tpu.memory_space<vmem>>, vector<1x1x4x8xf32>
    %18 = vector.shape_cast %17 : vector<1x1x4x8xf32> to vector<4x8xf32>
    %cst_25 = arith.constant dense<0.000000e+00> : vector<256x8xf32>
    %19 = tpu.matmul %16, %18, %cst_25 {dimension_numbers = #tpu.dot_dimension_numbers<[1], [0], [0], [1], [0, 0, 1, 1], [], []>} : vector<256x4xf32>, vector<4x8xf32>, vector<256x8xf32> -> vector<256x8xf32>
    %20 = arith.addf %14, %19 : vector<256x8xf32>
    %c0_26 = arith.constant 0 : index
    %c2 = arith.constant 2 : index
    %c0_27 = arith.constant 0 : index
    %21 = vector.load %arg6[%c0_26, %c2, %c0_27] : memref<18x18x4xf32, #tpu.memory_space<vmem>>, vector<16x16x4xf32>
    %22 = vector.shape_cast %21 : vector<16x16x4xf32> to vector<256x4xf32>
    %c0_28 = arith.constant 0 : index
    %c2_29 = arith.constant 2 : index
    %c0_30 = arith.constant 0 : index
    %c0_31 = arith.constant 0 : index
    %23 = vector.load %arg2[%c0_28, %c2_29, %c0_30, %c0_31] : memref<3x3x4x8xf32, #tpu.memory_space<vmem>>, vector<1x1x4x8xf32>
    %24 = vector.shape_cast %23 : vector<1x1x4x8xf32> to vector<4x8xf32>
    %cst_32 = arith.constant dense<0.000000e+00> : vector<256x8xf32>
    %25 = tpu.matmul %22, %24, %cst_32 {dimension_numbers = #tpu.dot_dimension_numbers<[1], [0], [0], [1], [0, 0, 1, 1], [], []>} : vector<256x4xf32>, vector<4x8xf32>, vector<256x8xf32> -> vector<256x8xf32>
    %26 = arith.addf %20, %25 : vector<256x8xf32>
    %c1_33 = arith.constant 1 : index
    %c0_34 = arith.constant 0 : index
    %c0_35 = arith.constant 0 : index
    %27 = vector.load %arg6[%c1_33, %c0_34, %c0_35] : memref<18x18x4xf32, #tpu.memory_space<vmem>>, vector<16x16x4xf32>
    %28 = vector.shape_cast %27 : vector<16x16x4xf32> to vector<256x4xf32>
    %c1_36 = arith.constant 1 : index
    %c0_37 = arith.constant 0 : index
    %c0_38 = arith.constant 0 : index
    %c0_39 = arith.constant 0 : index
    %29 = vector.load %arg2[%c1_36, %c0_37, %c0_38, %c0_39] : memref<3x3x4x8xf32, #tpu.memory_space<vmem>>, vector<1x1x4x8xf32>
    %30 = vector.shape_cast %29 : vector<1x1x4x8xf32> to vector<4x8xf32>
    %cst_40 = arith.constant dense<0.000000e+00> : vector<256x8xf32>
    %31 = tpu.matmul %28, %30, %cst_40 {dimension_numbers = #tpu.dot_dimension_numbers<[1], [0], [0], [1], [0, 0, 1, 1], [], []>} : vector<256x4xf32>, vector<4x8xf32>, vector<256x8xf32> -> vector<256x8xf32>
    %32 = arith.addf %26, %31 : vector<256x8xf32>
    %c1_41 = arith.constant 1 : index
    %c1_42 = arith.constant 1 : index
    %c0_43 = arith.constant 0 : index
    %33 = vector.load %arg6[%c1_41, %c1_42, %c0_43] : memref<18x18x4xf32, #tpu.memory_space<vmem>>, vector<16x16x4xf32>
    %34 = vector.shape_cast %33 : vector<16x16x4xf32> to vector<256x4xf32>
    %c1_44 = arith.constant 1 : index
    %c1_45 = arith.constant 1 : index
    %c0_46 = arith.constant 0 : index
    %c0_47 = arith.constant 0 : index
    %35 = vector.load %arg2[%c1_44, %c1_45, %c0_46, %c0_47] : memref<3x3x4x8xf32, #tpu.memory_space<vmem>>, vector<1x1x4x8xf32>
    %36 = vector.shape_cast %35 : vector<1x1x4x8xf32> to vector<4x8xf32>
    %cst_48 = arith.constant dense<0.000000e+00> : vector<256x8xf32>
    %37 = tpu.matmul %34, %36, %cst_48 {dimension_numbers = #tpu.dot_dimension_numbers<[1], [0], [0], [1], [0, 0, 1, 1], [], []>} : vector<256x4xf32>, vector<4x8xf32>, vector<256x8xf32> -> vector<256x8xf32>
    %38 = arith.addf %32, %37 : vector<256x8xf32>
    %c1_49 = arith.constant 1 : index
    %c2_50 = arith.constant 2 : index
    %c0_51 = arith.constant 0 : index
    %39 = vector.load %arg6[%c1_49, %c2_50, %c0_51] : memref<18x18x4xf32, #tpu.memory_space<vmem>>, vector<16x16x4xf32>
    %40 = vector.shape_cast %39 : vector<16x16x4xf32> to vector<256x4xf32>
    %c1_52 = arith.constant 1 : index
    %c2_53 = arith.constant 2 : index
    %c0_54 = arith.constant 0 : index
    %c0_55 = arith.constant 0 : index
    %41 = vector.load %arg2[%c1_52, %c2_53, %c0_54, %c0_55] : memref<3x3x4x8xf32, #tpu.memory_space<vmem>>, vector<1x1x4x8xf32>
    %42 = vector.shape_cast %41 : vector<1x1x4x8xf32> to vector<4x8xf32>
    %cst_56 = arith.constant dense<0.000000e+00> : vector<256x8xf32>
    %43 = tpu.matmul %40, %42, %cst_56 {dimension_numbers = #tpu.dot_dimension_numbers<[1], [0], [0], [1], [0, 0, 1, 1], [], []>} : vector<256x4xf32>, vector<4x8xf32>, vector<256x8xf32> -> vector<256x8xf32>
    %44 = arith.addf %38, %43 : vector<256x8xf32>
    %c2_57 = arith.constant 2 : index
    %c0_58 = arith.constant 0 : index
    %c0_59 = arith.constant 0 : index
    %45 = vector.load %arg6[%c2_57, %c0_58, %c0_59] : memref<18x18x4xf32, #tpu.memory_space<vmem>>, vector<16x16x4xf32>
    %46 = vector.shape_cast %45 : vector<16x16x4xf32> to vector<256x4xf32>
    %c2_60 = arith.constant 2 : index
    %c0_61 = arith.constant 0 : index
    %c0_62 = arith.constant 0 : index
    %c0_63 = arith.constant 0 : index
    %47 = vector.load %arg2[%c2_60, %c0_61, %c0_62, %c0_63] : memref<3x3x4x8xf32, #tpu.memory_space<vmem>>, vector<1x1x4x8xf32>
    %48 = vector.shape_cast %47 : vector<1x1x4x8xf32> to vector<4x8xf32>
    %cst_64 = arith.constant dense<0.000000e+00> : vector<256x8xf32>
    %49 = tpu.matmul %46, %48, %cst_64 {dimension_numbers = #tpu.dot_dimension_numbers<[1], [0], [0], [1], [0, 0, 1, 1], [], []>} : vector<256x4xf32>, vector<4x8xf32>, vector<256x8xf32> -> vector<256x8xf32>
    %50 = arith.addf %44, %49 : vector<256x8xf32>
    %c2_65 = arith.constant 2 : index
    %c1_66 = arith.constant 1 : index
    %c0_67 = arith.constant 0 : index
    %51 = vector.load %arg6[%c2_65, %c1_66, %c0_67] : memref<18x18x4xf32, #tpu.memory_space<vmem>>, vector<16x16x4xf32>
    %52 = vector.shape_cast %51 : vector<16x16x4xf32> to vector<256x4xf32>
    %c2_68 = arith.constant 2 : index
    %c1_69 = arith.constant 1 : index
    %c0_70 = arith.constant 0 : index
    %c0_71 = arith.constant 0 : index
    %53 = vector.load %arg2[%c2_68, %c1_69, %c0_70, %c0_71] : memref<3x3x4x8xf32, #tpu.memory_space<vmem>>, vector<1x1x4x8xf32>
    %54 = vector.shape_cast %53 : vector<1x1x4x8xf32> to vector<4x8xf32>
    %cst_72 = arith.constant dense<0.000000e+00> : vector<256x8xf32>
    %55 = tpu.matmul %52, %54, %cst_72 {dimension_numbers = #tpu.dot_dimension_numbers<[1], [0], [0], [1], [0, 0, 1, 1], [], []>} : vector<256x4xf32>, vector<4x8xf32>, vector<256x8xf32> -> vector<256x8xf32>
    %56 = arith.addf %50, %55 : vector<256x8xf32>
    %c2_73 = arith.constant 2 : index
    %c2_74 = arith.constant 2 : index
    %c0_75 = arith.constant 0 : index
    %57 = vector.load %arg6[%c2_73, %c2_74, %c0_75] : memref<18x18x4xf32, #tpu.memory_space<vmem>>, vector<16x16x4xf32>
    %58 = vector.shape_cast %57 : vector<16x16x4xf32> to vector<256x4xf32>
    %c2_76 = arith.constant 2 : index
    %c2_77 = arith.constant 2 : index
    %c0_78 = arith.constant 0 : index
    %c0_79 = arith.constant 0 : index
    %59 = vector.load %arg2[%c2_76, %c2_77, %c0_78, %c0_79] : memref<3x3x4x8xf32, #tpu.memory_space<vmem>>, vector<1x1x4x8xf32>
    %60 = vector.shape_cast %59 : vector<1x1x4x8xf32> to vector<4x8xf32>
    %cst_80 = arith.constant dense<0.000000e+00> : vector<256x8xf32>
    %61 = tpu.matmul %58, %60, %cst_80 {dimension_numbers = #tpu.dot_dimension_numbers<[1], [0], [0], [1], [0, 0, 1, 1], [], []>} : vector<256x4xf32>, vector<4x8xf32>, vector<256x8xf32> -> vector<256x8xf32>
    %62 = arith.addf %56, %61 : vector<256x8xf32>
    %c0_81 = arith.constant 0 : index
    %c0_82 = arith.constant 0 : index
    %63 = vector.load %arg4[%c0_81, %c0_82] : memref<1x8xf32, #tpu.memory_space<vmem>>, vector<1x8xf32>
    %cst_83 = arith.constant dense<0.000000e+00> : vector<8xf32>
    %64 = vector.multi_reduction <add>, %62, %cst_83 [0] : vector<256x8xf32> to vector<8xf32>
    %65 = vector.shape_cast %64 : vector<8xf32> to vector<1x8xf32>
    %66 = arith.addf %63, %65 : vector<1x8xf32>
    %c0_84 = arith.constant 0 : index
    %c0_85 = arith.constant 0 : index
    %67 = vector.load %arg4[%c0_84, %c0_85] : memref<1x8xf32, #tpu.memory_space<vmem>>, vector<1x8xf32>
    tpu.vector_store %arg4[%c0_84, %c0_85], %66 {strides = array<i32>} : memref<1x8xf32, #tpu.memory_space<vmem>>, vector<1x8xf32>,
    %c0_86 = arith.constant 0 : index
    %c0_87 = arith.constant 0 : index
    %68 = vector.load %arg5[%c0_86, %c0_87] : memref<1x8xf32, #tpu.memory_space<vmem>>, vector<1x8xf32>
    %69 = arith.mulf %62, %62 : vector<256x8xf32>
    %cst_88 = arith.constant dense<0.000000e+00> : vector<8xf32>
    %70 = vector.multi_reduction <add>, %69, %cst_88 [0] : vector<256x8xf32> to vector<8xf32>
    %71 = vector.shape_cast %70 : vector<8xf32> to vector<1x8xf32>
    %72 = arith.addf %68, %71 : vector<1x8xf32>
    %c0_89 = arith.constant 0 : index
    %c0_90 = arith.constant 0 : index
    %73 = vector.load %arg5[%c0_89, %c0_90] : memref<1x8xf32, #tpu.memory_space<vmem>>, vector<1x8xf32>
    tpu.vector_store %arg5[%c0_89, %c0_90], %72 {strides = array<i32>} : memref<1x8xf32, #tpu.memory_space<vmem>>, vector<1x8xf32>,
    %74 = vector.shape_cast %62 : vector<256x8xf32> to vector<16x16x8xf32>
    %c0_91 = arith.constant 0 : index
    %c0_92 = arith.constant 0 : index
    %c0_93 = arith.constant 0 : index
    %c0_94 = arith.constant 0 : index
    %75 = vector.load %arg3[%c0_91, %c0_92, %c0_93, %c0_94] : memref<1x16x16x8xf32, #tpu.memory_space<vmem>>, vector<1x16x16x8xf32>
    %76 = vector.shape_cast %75 : vector<1x16x16x8xf32> to vector<16x16x8xf32>
    %77 = vector.shape_cast %74 : vector<16x16x8xf32> to vector<1x16x16x8xf32>
    tpu.vector_store %arg3[%c0_91, %c0_92, %c0_93, %c0_94], %77 {strides = array<i32>} : memref<1x16x16x8xf32, #tpu.memory_space<vmem>>, vector<1x16x16x8xf32>,
    return
  }
  func.func @transform_0(%arg0: i32) -> (i32, i32, i32, i32) {
    %c0_i32 = arith.constant 0 : i32
    %c0_i32_0 = arith.constant 0 : i32
    %c0_i32_1 = arith.constant 0 : i32
    %c0_i32_2 = arith.constant 0 : i32
    return %arg0, %c0_i32, %c0_i32_0, %c0_i32_1 : i32, i32, i32, i32
  }
  func.func @transform_1(%arg0: i32) -> (i32, i32, i32, i32) {
    %c0_i32 = arith.constant 0 : i32
    %c0_i32_0 = arith.constant 0 : i32
    %c0_i32_1 = arith.constant 0 : i32
    %c0_i32_2 = arith.constant 0 : i32
    %c0_i32_3 = arith.constant 0 : i32
    return %c0_i32, %c0_i32_0, %c0_i32_1, %c0_i32_2 : i32, i32, i32, i32
  }
  func.func @transform_2(%arg0: i32) -> (i32, i32, i32, i32) {
    %c0_i32 = arith.constant 0 : i32
    %c0_i32_0 = arith.constant 0 : i32
    %c0_i32_1 = arith.constant 0 : i32
    %c0_i32_2 = arith.constant 0 : i32
    return %arg0, %c0_i32, %c0_i32_0, %c0_i32_1 : i32, i32, i32, i32
  }
  func.func @transform_3(%arg0: i32) -> (i32, i32) {
    %c0_i32 = arith.constant 0 : i32
    %c0_i32_0 = arith.constant 0 : i32
    %c0_i32_1 = arith.constant 0 : i32
    return %c0_i32, %c0_i32_0 : i32, i32
  }
  func.func @transform_4(%arg0: i32) -> (i32, i32) {
    %c0_i32 = arith.constant 0 : i32
    %c0_i32_0 = arith.constant 0 : i32
    %c0_i32_1 = arith.constant 0 : i32
    return %c0_i32, %c0_i32_0 : i32, i32
  }
}

</mosaic_0001>

<bundles_post_ra>
// kernel: tpu_custom_call.1
= control target key start
LH: loop header
LB: loop body
LE: loop exit
PB: predicated region body
PF: predicated region fallthrough
CT: control target
= control target key end

     0   :  { %10 = vsyncpa [#allocation4], 0  ;;  %s6712_s0 = inlined_call_operand.vmem [shape: f32[2,16,16,4], index: 0, kind: input, shape index: {}]   ;;  %s6713_s1 = inlined_call_operand.vmem [shape: f32[3,3,4,8], index: 1, kind: input, shape index: {}]   ;;  %s6714_s2 = inlined_call_operand.vmem [shape: f32[2,16,16,8], index: 2, kind: output, shape index: {0}]   ;;  %s6715_s3 = inlined_call_operand.hbm [shape: f32[1,8], index: 3, kind: output, shape index: {1}]   ;;  %s6716_s4 = inlined_call_operand.hbm [shape: f32[1,8], index: 4, kind: output, shape index: {2}]  }
   0x1   :  { %11 = vsyncpa [#allocation6], 0  ;;  %s5530_s15 = smov 0  }
   0x2 LB: > { %s5536_s16 = sadd.s32 4294967295, %s5499_s15   ;;  %p4085_p0 = scmp.ge.s32.totalorder %s5499_s15, 1  ;;  %s5499_s15 = sphi %s5530_s15, %s17_s15  }
   0x3   : > { %p159_p1 = scmp.lt.s32.totalorder %s5499_s15, 3 }
   0x5   : > { %p160_p2 = pnand %p4085_p0, %p159_p1 }
   0x7   : > { %163 = sbr.rel (%p160_p2) target bundleno = 618 (0x26a), region = 28 }
   0xe   : > { %p185_p3 = scmp.lt.s32.totalorder %s5536_s16, 1  ;;  %p4090_p4 = scmp.ne.s32.totalorder %s5536_s16, 0 }
   0xf   : > { %vm199_vm0 = vcmask (!%p4090_p4), 57344   ;;  %v5501_v0 = vmov (!%p4090_p4), 0.0  }
  0x10   : > { %s186_s17 = scalar_select %p185_p3, %s5536_s16, 1 }
  0x11   : > { %198 = sbr.rel (%p4090_p4) target bundleno = 24 (0x18), region = 32  ;;  %200 = vst.msk [vmem:[#allocation3] sm:$0x1] (!%p4090_p4), %vm199_vm0, %v5501_v0  ;;  %201 = vst.msk [vmem:[#allocation5] sm:$0x1] (!%p4090_p4), %vm199_vm0, %v5501_v0 }
  0x12   : > { %s4402_s18 = sshll.u32 %s186_s17, 8 }
  0x13   : > { %s5545_s21 = scalar_lea.vmem %s6712_s0, %s4402_s18  ;;  %s5550_s24 = scalar_lea.vmem %s6714_s2, %s4402_s18 }
  0x18 PF: > { %v4091_v1 = vld [vmem:[%s6713_s1 + $0x4] sm:$0xf]  ;;  %vm486_vm1 = vcmask 1043456   ;;  %v5559_v2 = vld [vmem:[%s6713_s1 + $0x10] sm:$0xf]  ;;  %vm234_vm2 = vcmask 31744  }
  0x19   : > { %4701 = vmatprep.subr.msk.mxu1 %vm486_vm1, %v4091_v1  ;;  %4901 = vmatprep.subr.msk.mxu0 %vm486_vm1, %v5559_v2  ;;  %vm237_vm3 = vcmask 25600   ;;  %v5567_v3 = vld [vmem:[%s6713_s1] sm:$0xf]  ;;  %v5573_v5 = vld [vmem:[%s5545_s21 + $0x8] sm:$0xff]  ;;  %v5502_v6 = vmov 0.0   ;;  %v204_v8 = vld [vmem:[%s5545_s21 + $0x10] sm:$0xff] }
  0x1a   : > { %v5570_v4 = vld [vmem:[%s5545_s21] sm:$0xff]  ;;  %4702 = vmatpush3.msk.msra.mxu1 %vm486_vm1, %v4091_v1  ;;  %235 = vst.msk [vmem:[#allocation2] sm:$0xff] %vm234_vm2, %v5502_v6  ;;  %236 = vst.msk [vmem:[#allocation2 + $0x8] sm:$0xff] %vm234_vm2, %v5502_v6  ;;  %4902 = vmatpush3.msk.msra.mxu0 %vm486_vm1, %v5559_v2  ;;  %v4260_v7 = vld [vmem:[%s6713_s1 + $0x14] sm:$0xf]  ;;  %vm3771_vm4 = vcmask 64512  }
  0x1b   : > { %239 = vst.msk [vmem:[#allocation2 + $0x18] sm:$0xff] %vm234_vm2, %v5502_v6  ;;  %240 = vst.msk [vmem:[#allocation2 + $0x20] sm:$0xff] %vm234_vm2, %v5502_v6  ;;  %v205_v9 = vld [vmem:[%s5545_s21 + $0x18] sm:$0xff]  ;;  %4751 = vmatprep.subr.msk.mxu1 %vm486_vm1, %v5567_v3  ;;  %4951 = vmatprep.subr.msk.mxu0 %vm486_vm1, %v4260_v7  ;;  %v206_v10 = vld [vmem:[%s5545_s21 + $0x20] sm:$0xff]  ;;  %s5503_s19 = smov [#allocation3]   ;;  %vm3842_vm5 = vcmask 57344  }
  0x1c   : > { %242 = vst.msk [vmem:[#allocation2 + $0x30] sm:$0xff] %vm234_vm2, %v5502_v6  ;;  %243 = vst.msk [vmem:[#allocation2 + $0x38] sm:$0xff] %vm234_vm2, %v5502_v6  ;;  %v207_v11 = vld [vmem:[%s5545_s21 + $0x28] sm:$0xff]  ;;  %v208_v12 = vld [vmem:[%s5545_s21 + $0x30] sm:$0xff]  ;;  %s3995_s20 = sshll.u32 %s5503_s19, 4  ;;  %p5417_p5 = scmp.eq.s32.totalorder %s5536_s16, 1  ;;  %s3996_s20 = int_to_ptr.vmem [resolvable:$true] %s3995_s20 }
  0x1d   : > { %245 = vst.msk [vmem:[#allocation2 + $0x48] sm:$0xff] %vm234_vm2, %v5502_v6  ;;  %246 = vst.msk [vmem:[#allocation2 + $0x50] sm:$0xff] %vm234_vm2, %v5502_v6  ;;  %v209_v13 = vld [vmem:[%s5545_s21 + $0x38] sm:$0xff]  ;;  %v210_v14 = vld [vmem:[%s5545_s21 + $0x40] sm:$0xff]  ;;  %s5433_s23 = scalar_lea.vmem %s3996_s20, 16  ;;  %p5440_p9 = scmp.lt.s32.totalorder %s3996_s20, %s3996_s20 }
  0x1e   : > { %248 = vst.msk [vmem:[#allocation2 + $0x60] sm:$0xff] %vm234_vm2, %v5502_v6  ;;  %249 = vst.msk [vmem:[#allocation2 + $0x68] sm:$0xff] %vm234_vm2, %v5502_v6  ;;  %v211_v15 = vld [vmem:[%s5545_s21 + $0x48] sm:$0xff]  ;;  %v212_v16 = vld [vmem:[%s5545_s21 + $0x50] sm:$0xff]  ;;  %p5434_p6 = scmp.ne.s32.totalorder %s3996_s20, %s5433_s23 }
  0x1f   : > { %251 = vst.msk [vmem:[#allocation2 + $0x78] sm:$0xff] %vm234_vm2, %v5502_v6  ;;  %252 = vst.msk [vmem:[#allocation2 + $0x80] sm:$0xff] %vm234_vm2, %v5502_v6  ;;  %v213_v17 = vld [vmem:[%s5545_s21 + $0x58] sm:$0xff]  ;;  %v214_v18 = vld [vmem:[%s5545_s21 + $0x60] sm:$0xff] }
  0x20   : > { %254 = vst.msk [vmem:[#allocation2 + $0x90] sm:$0xff] %vm234_vm2, %v5502_v6  ;;  %255 = vst.msk [vmem:[#allocation2 + $0x98] sm:$0xff] %vm234_vm2, %v5502_v6  ;;  %v215_v19 = vld [vmem:[%s5545_s21 + $0x68] sm:$0xff]  ;;  %v216_v20 = vld [vmem:[%s5545_s21 + $0x70] sm:$0xff]  ;;  %p5435_p7 = pnand %p5434_p6, %p5417_p5 }
  0x21   : > { %257 = vst.msk [vmem:[#allocation2 + $0xa8] sm:$0xff] %vm234_vm2, %v5502_v6  ;;  %258 = vst.msk [vmem:[#allocation2 + $0xb0] sm:$0xff] %vm234_vm2, %v5502_v6  ;;  %v217_v21 = vld [vmem:[%s5545_s21 + $0x78] sm:$0xff]  ;;  %v218_v22 = vld [vmem:[%s5545_s21 + $0x80] sm:$0xff] }
  0x22   : > { %260 = vst.msk [vmem:[#allocation2 + $0xc0] sm:$0xff] %vm234_vm2, %v5502_v6  ;;  %261 = vst.msk [vmem:[#allocation2 + $0xc8] sm:$0xff] %vm234_vm2, %v5502_v6  ;;  %v219_v23 = vld [vmem:[%s5545_s21 + $0x88] sm:$0xff]  ;;  %v220_v24 = vld [vmem:[%s5545_s21 + $0x90] sm:$0xff]  ;;  %p5436_p8 = pneg %p5435_p7 }
  0x23   : > { %263 = vst.msk [vmem:[#allocation2 + $0xd8] sm:$0xff] %vm234_vm2, %v5502_v6  ;;  %264 = vst.msk [vmem:[#allocation2 + $0xe0] sm:$0xff] %vm234_vm2, %v5502_v6  ;;  %v221_v25 = vld [vmem:[%s5545_s21 + $0x98] sm:$0xff]  ;;  %v222_v26 = vld [vmem:[%s5545_s21 + $0xa0] sm:$0xff] }
  0x24   : > { %266 = vst.msk [vmem:[#allocation2 + $0xf0] sm:$0xff] %vm234_vm2, %v5502_v6  ;;  %267 = vst.msk [vmem:[#allocation2 + $0xf8] sm:$0xff] %vm234_vm2, %v5502_v6  ;;  %v356_v27 = vld [vmem:[#allocation2 + $0x1] sm:$0xff]  ;;  %v5690_v33 = vld [vmem:[%s6713_s1 + $0x18] sm:$0xf] }
  0x25   : > { %269 = vst.msk [vmem:[#allocation2 + $0x108] sm:$0xff] %vm234_vm2, %v5502_v6  ;;  %270 = vst.msk [vmem:[#allocation2 + $0x110] sm:$0xff] %vm234_vm2, %v5502_v6  ;;  %v223_v29 = vld [vmem:[%s5545_s21 + $0xa8] sm:$0xff]  ;;  %4703 = vmatprep.mubr.msk.f32.mxu1 %vm234_vm2, %v356_v27  ;;  %v224_v38 = vld [vmem:[%s5545_s21 + $0xb0] sm:$0xff] }
  0x26   : > { %272 = vst.msk [vmem:[#allocation2 + $0x120] sm:$0xff] %vm234_vm2, %v5502_v6  ;;  %273 = vst.msk [vmem:[#allocation2 + $0x128] sm:$0xff] %vm234_vm2, %v5502_v6  ;;  %v225_v39 = vld [vmem:[%s5545_s21 + $0xb8] sm:$0xff]  ;;  %v226_v41 = vld [vmem:[%s5545_s21 + $0xc0] sm:$0xff] }
  0x27   : > { %275 = vst.msk [vmem:[#allocation2 + $0x138] sm:$0xff] %vm234_vm2, %v5502_v6  ;;  %276 = vst.msk [vmem:[#allocation2 + $0x140] sm:$0xff] %vm234_vm2, %v5502_v6  ;;  %v227_v42 = vld [vmem:[%s5545_s21 + $0xc8] sm:$0xff]  ;;  %v228_v44 = vld [vmem:[%s5545_s21 + $0xd0] sm:$0xff] }
  0x28   : > { %278 = vst.msk [vmem:[#allocation2 + $0x150] sm:$0xff] %vm234_vm2, %v5502_v6  ;;  %279 = vst.msk [vmem:[#allocation2 + $0x158] sm:$0xff] %vm234_vm2, %v5502_v6  ;;  %v229_v45 = vld [vmem:[%s5545_s21 + $0xd8] sm:$0xff]  ;;  %v230_v46 = vld [vmem:[%s5545_s21 + $0xe0] sm:$0xff] }
  0x29   : > { %281 = vst.msk [vmem:[#allocation2 + $0x168] sm:$0xff] %vm234_vm2, %v5502_v6  ;;  %282 = vst.msk [vmem:[#allocation2 + $0x170] sm:$0xff] %vm234_vm2, %v5502_v6  ;;  %v231_v47 = vld [vmem:[%s5545_s21 + $0xe8] sm:$0xff]  ;;  %v232_v57 = vld [vmem:[%s5545_s21 + $0xf0] sm:$0xff] }
  0x2a   : > { %284 = vst.msk [vmem:[#allocation2 + $0x180] sm:$0xff] %vm234_vm2, %v5502_v6  ;;  %285 = vst.msk [vmem:[#allocation2 + $0x188] sm:$0xff] %vm234_vm2, %v5502_v6  ;;  %v5759_v50 = vld [vmem:[%s6713_s1 + $0x8] sm:$0xf]  ;;  %v233_v58 = vld [vmem:[%s5545_s21 + $0xf8] sm:$0xff]  ;;  %s5504_s21 = smov [#allocation5]  }
  0x2b   : > { %287 = vst.msk [vmem:[#allocation2 + $0x198] sm:$0xff] %vm234_vm2, %v5502_v6  ;;  %288 = vst.msk [vmem:[#allocation2 + $0x1a0] sm:$0xff] %vm234_vm2, %v5502_v6  ;;  %v5822_v62 = vld [vmem:[%s6713_s1 + $0x1c] sm:$0xf]  ;;  %s4006_s22 = sshll.u32 %s5504_s21, 4  ;;  %s6656_s22 = int_to_ptr.vmem [resolvable:$true] %s4006_s22 }
  0x2c   : > { %238 = vst.msk [vmem:[#allocation2 + $0x10] sm:$0x3] %vm237_vm3, %v5502_v6  ;;  %241 = vst.msk [vmem:[#allocation2 + $0x28] sm:$0x3] %vm237_vm3, %v5502_v6 }
  0x2d   : > { %244 = vst.msk [vmem:[#allocation2 + $0x40] sm:$0x3] %vm237_vm3, %v5502_v6  ;;  %247 = vst.msk [vmem:[#allocation2 + $0x58] sm:$0x3] %vm237_vm3, %v5502_v6 }
  0x2e   : > { %250 = vst.msk [vmem:[#allocation2 + $0x70] sm:$0x3] %vm237_vm3, %v5502_v6  ;;  %253 = vst.msk [vmem:[#allocation2 + $0x88] sm:$0x3] %vm237_vm3, %v5502_v6 }
  0x2f   : > { %256 = vst.msk [vmem:[#allocation2 + $0xa0] sm:$0x3] %vm237_vm3, %v5502_v6  ;;  %259 = vst.msk [vmem:[#allocation2 + $0xb8] sm:$0x3] %vm237_vm3, %v5502_v6 }
  0x30   : > { %262 = vst.msk [vmem:[#allocation2 + $0xd0] sm:$0x3] %vm237_vm3, %v5502_v6  ;;  %265 = vst.msk [vmem:[#allocation2 + $0xe8] sm:$0x3] %vm237_vm3, %v5502_v6 }
  0x31   : > { %268 = vst.msk [vmem:[#allocation2 + $0x100] sm:$0x3] %vm237_vm3, %v5502_v6  ;;  %271 = vst.msk [vmem:[#allocation2 + $0x118] sm:$0x3] %vm237_vm3, %v5502_v6 }
  0x32   : > { %274 = vst.msk [vmem:[#allocation2 + $0x130] sm:$0x3] %vm237_vm3, %v5502_v6  ;;  %277 = vst.msk [vmem:[#allocation2 + $0x148] sm:$0x3] %vm237_vm3, %v5502_v6 }
  0x33   : > { %280 = vst.msk [vmem:[#allocation2 + $0x160] sm:$0x3] %vm237_vm3, %v5502_v6  ;;  %283 = vst.msk [vmem:[#allocation2 + $0x178] sm:$0x3] %vm237_vm3, %v5502_v6  ;;  %v357_v28 = vld [vmem:[#allocation2 + $0x9] sm:$0xff] }
  0x34   : > { %286 = vst.msk [vmem:[#allocation2 + $0x190] sm:$0x3] %vm237_vm3, %v5502_v6  ;;  %289 = vst.msk [vmem:[#allocation2 + $0x1a8] sm:$0x3] %vm237_vm3, %v5502_v6  ;;  %4704 = vmatmul.mubr.msk.f32.vlgmr.msra.gmra.mrb[0].mxu1 %vm234_vm2, %v357_v28  ;;  %v324_v28 = vld [vmem:[#allocation2 + $0x8] sm:$0xff] }
  0x35   : > { %291 = vst.msk [vmem:[#allocation2 + $0x19] sm:$0xff] %vm234_vm2, %v5570_v4  ;;  %292 = vst.msk [vmem:[#allocation2 + $0x21] sm:$0xff] %vm234_vm2, %v5573_v5  ;;  %4752 = vmatpush3.msk.msra.mxu1 %vm486_vm1, %v5567_v3 }
  0x36   : > { %293 = vst.msk [vmem:[#allocation2 + $0x31] sm:$0xff] %vm234_vm2, %v204_v8  ;;  %294 = vst.msk [vmem:[#allocation2 + $0x39] sm:$0xff] %vm234_vm2, %v205_v9  ;;  %4801 = vmatprep.subr.msk.mxu1 %vm486_vm1, %v5759_v50 }
  0x37   : > { %295 = vst.msk [vmem:[#allocation2 + $0x49] sm:$0xff] %vm234_vm2, %v206_v10  ;;  %296 = vst.msk [vmem:[#allocation2 + $0x51] sm:$0xff] %vm234_vm2, %v207_v11 }
  0x38   : > { %297 = vst.msk [vmem:[#allocation2 + $0x61] sm:$0xff] %vm234_vm2, %v208_v12  ;;  %298 = vst.msk [vmem:[#allocation2 + $0x69] sm:$0xff] %vm234_vm2, %v209_v13 }
  0x39   : > { %299 = vst.msk [vmem:[#allocation2 + $0x79] sm:$0xff] %vm234_vm2, %v210_v14  ;;  %300 = vst.msk [vmem:[#allocation2 + $0x81] sm:$0xff] %vm234_vm2, %v211_v15 }
  0x3a   : > { %301 = vst.msk [vmem:[#allocation2 + $0x91] sm:$0xff] %vm234_vm2, %v212_v16  ;;  %302 = vst.msk [vmem:[#allocation2 + $0x99] sm:$0xff] %vm234_vm2, %v213_v17 }
  0x3b   : > { %303 = vst.msk [vmem:[#allocation2 + $0xa9] sm:$0xff] %vm234_vm2, %v214_v18  ;;  %304 = vst.msk [vmem:[#allocation2 + $0xb1] sm:$0xff] %vm234_vm2, %v215_v19 }
  0x3c   : > { %305 = vst.msk [vmem:[#allocation2 + $0xc1] sm:$0xff] %vm234_vm2, %v216_v20  ;;  %306 = vst.msk [vmem:[#allocation2 + $0xc9] sm:$0xff] %vm234_vm2, %v217_v21  ;;  %v1819_v30 = vld [vmem:[#allocation2 + $0x19] sm:$0xff]  ;;  %v1820_v31 = vld [vmem:[#allocation2 + $0x21] sm:$0xff] }
  0x3d   : > { %307 = vst.msk [vmem:[#allocation2 + $0xd9] sm:$0xff] %vm234_vm2, %v218_v22  ;;  %308 = vst.msk [vmem:[#allocation2 + $0xe1] sm:$0xff] %vm234_vm2, %v219_v23  ;;  %4903 = vmatprep.mubr.msk.f32.mxu0 %vm234_vm2, %v1819_v30  ;;  %v5685_v32 = vld [vmem:[#allocation2 + $0x31] sm:$0xff]  ;;  %4706 = vmatprep.mubr.msk.f32.mxu1 %vm234_vm2, %v1819_v30  ;;  %v5697_v34 = vld [vmem:[#allocation2 + $0x39] sm:$0xff] }
  0x3e   : > { %309 = vst.msk [vmem:[#allocation2 + $0xf1] sm:$0xff] %vm234_vm2, %v220_v24  ;;  %310 = vst.msk [vmem:[#allocation2 + $0xf9] sm:$0xff] %vm234_vm2, %v221_v25  ;;  %4904 = vmatmul.mubr.msk.f32.vlgmr.msra.gmra.mrb[0].mxu0 %vm234_vm2, %v1820_v31  ;;  %v5701_v35 = vld [vmem:[#allocation2 + $0x49] sm:$0xff]  ;;  %4707 = vmatmul.mubr.msk.f32.gmra.mrb[2].mxu1 %vm234_vm2, %v1820_v31  ;;  %v5712_v36 = vld [vmem:[#allocation2 + $0x51] sm:$0xff] }
  0x3f   : > { %311 = vst.msk [vmem:[#allocation2 + $0x109] sm:$0xff] %vm234_vm2, %v222_v26  ;;  %312 = vst.msk [vmem:[#allocation2 + $0x111] sm:$0xff] %vm234_vm2, %v223_v29  ;;  %4952 = vmatpush3.msk.msra.mxu0 %vm486_vm1, %v4260_v7  ;;  %4906 = vmatprep.mubr.msk.f32.mxu0 %vm234_vm2, %v5685_v32  ;;  %v5714_v37 = vld [vmem:[#allocation2 + $0x61] sm:$0xff]  ;;  %v5726_v40 = vld [vmem:[#allocation2 + $0x69] sm:$0xff] }
  0x40   : > { %5001 = vmatprep.subr.msk.mxu0 %vm486_vm1, %v5690_v33  ;;  %4709 = vmatprep.mubr.msk.f32.mxu1 %vm234_vm2, %v5685_v32  ;;  %313 = vst.msk [vmem:[#allocation2 + $0x121] sm:$0xff] %vm234_vm2, %v224_v38  ;;  %314 = vst.msk [vmem:[#allocation2 + $0x129] sm:$0xff] %vm234_vm2, %v225_v39  ;;  %v5732_v43 = vld [vmem:[#allocation2 + $0x79] sm:$0xff]  ;;  %v5750_v48 = vld [vmem:[#allocation2 + $0x81] sm:$0xff] }
  0x41   : > { %315 = vst.msk [vmem:[#allocation2 + $0x139] sm:$0xff] %vm234_vm2, %v226_v41  ;;  %316 = vst.msk [vmem:[#allocation2 + $0x141] sm:$0xff] %vm234_vm2, %v227_v42  ;;  %v5754_v49 = vld [vmem:[#allocation2 + $0x91] sm:$0xff]  ;;  %v5771_v51 = vld [vmem:[#allocation2 + $0x99] sm:$0xff] }
  0x42   : > { %4907 = vmatmul.mubr.msk.f32.gmra.mrb[2].mxu0 %vm234_vm2, %v5697_v34  ;;  %4710 = vmatmul.mubr.msk.f32.gmra.mrb[4].mxu1 %vm234_vm2, %v5697_v34  ;;  %317 = vst.msk [vmem:[#allocation2 + $0x151] sm:$0xff] %vm234_vm2, %v228_v44  ;;  %318 = vst.msk [vmem:[#allocation2 + $0x159] sm:$0xff] %vm234_vm2, %v229_v45  ;;  %v5773_v52 = vld [vmem:[#allocation2 + $0xa9] sm:$0xff]  ;;  %v5783_v53 = vld [vmem:[#allocation2 + $0xb1] sm:$0xff] }
  0x43   : > { %4909 = vmatprep.mubr.msk.f32.mxu0 %vm234_vm2, %v5701_v35  ;;  %4712 = vmatprep.mubr.msk.f32.mxu1 %vm234_vm2, %v5701_v35  ;;  %319 = vst.msk [vmem:[#allocation2 + $0x169] sm:$0xff] %vm234_vm2, %v230_v46  ;;  %320 = vst.msk [vmem:[#allocation2 + $0x171] sm:$0xff] %vm234_vm2, %v231_v47  ;;  %v5785_v54 = vld [vmem:[#allocation2 + $0xc1] sm:$0xff]  ;;  %v5795_v55 = vld [vmem:[#allocation2 + $0xc9] sm:$0xff] }
  0x44   : > { %v5797_v56 = vld [vmem:[#allocation2 + $0x1a] sm:$0xff]  ;;  %321 = vst.msk [vmem:[#allocation2 + $0x181] sm:$0xff] %vm234_vm2, %v232_v57  ;;  %322 = vst.msk [vmem:[#allocation2 + $0x189] sm:$0xff] %vm234_vm2, %v233_v58  ;;  %v5811_v59 = vld [vmem:[#allocation2 + $0x22] sm:$0xff] }
  0x45   : > { %v5813_v60 = vld [vmem:[#allocation2 + $0xd9] sm:$0xff]  ;;  %v5828_v63 = vld [vmem:[#allocation2 + $0xe1] sm:$0xff]  ;;  %v5836_v1 = vld [vmem:[#allocation2 + $0xf1] sm:$0xff] }
  0x46   : > { %4910 = vmatmul.mubr.msk.f32.gmra.mrb[4].mxu0 %vm234_vm2, %v5712_v36  ;;  %4713 = vmatmul.mubr.msk.f32.gmra.mrb[6].mxu1 %vm234_vm2, %v5712_v36  ;;  %v5815_v61 = vld [vmem:[#allocation2 + $0x32] sm:$0xff]  ;;  %6762 = vst [vmem:[#allocation9_spill] sm:$0xff] %v5828_v63  ;;  %v5834_v0 = vld [vmem:[#allocation2 + $0x3a] sm:$0xff]  ;;  %6763 = vst [vmem:[#allocation10_spill] sm:$0xff] %v5836_v1 }
  0x47   : > { %4912 = vmatprep.mubr.msk.f32.mxu0 %vm234_vm2, %v5714_v37  ;;  %4715 = vmatprep.mubr.msk.f32.mxu1 %vm234_vm2, %v5714_v37  ;;  %v5838_v3 = vld [vmem:[#allocation2 + $0x4a] sm:$0xff]  ;;  %v5848_v4 = vld [vmem:[#allocation2 + $0xf9] sm:$0xff]  ;;  %v5856_v7 = vld [vmem:[#allocation2 + $0x62] sm:$0xff] }
  0x48   : > { %6764 = vst [vmem:[#allocation11_spill] sm:$0xff] %v5848_v4  ;;  %v5852_v5 = vld [vmem:[#allocation2 + $0x52] sm:$0xff]  ;;  %v5854_v6 = vld [vmem:[#allocation2 + $0x109] sm:$0xff]  ;;  %v5870_v10 = vld [vmem:[#allocation2 + $0x121] sm:$0xff] }
  0x49   : > { %6765 = vst [vmem:[#allocation12_spill] sm:$0xff] %v5854_v6  ;;  %v5864_v8 = vld [vmem:[#allocation2 + $0x111] sm:$0xff]  ;;  %6767 = vst [vmem:[#allocation14_spill] sm:$0xff] %v5870_v10  ;;  %v5872_v11 = vld [vmem:[#allocation2 + $0x7a] sm:$0xff] }
  0x4a   : > { %4913 = vmatmul.mubr.msk.f32.gmra.mrb[6].mxu0 %vm234_vm2, %v5726_v40  ;;  %4716 = vmatmul.mubr.msk.f32.gmra.mrb[8].mxu1 %vm234_vm2, %v5726_v40  ;;  %6766 = vst [vmem:[#allocation13_spill] sm:$0xff] %v5864_v8  ;;  %v5868_v9 = vld [vmem:[#allocation2 + $0x6a] sm:$0xff]  ;;  %v5884_v13 = vld [vmem:[#allocation2 + $0x82] sm:$0xff]  ;;  %v5886_v14 = vld [vmem:[#allocation2 + $0x139] sm:$0xff] }
  0x4b   : > { %4915 = vmatprep.mubr.msk.f32.mxu0 %vm234_vm2, %v5732_v43  ;;  %4718 = vmatprep.mubr.msk.f32.mxu1 %vm234_vm2, %v5732_v43  ;;  %v5880_v12 = vld [vmem:[#allocation2 + $0x129] sm:$0xff]  ;;  %6769 = vst [vmem:[#allocation16_spill] sm:$0xff] %v5886_v14  ;;  %v5888_v15 = vld [vmem:[#allocation2 + $0x92] sm:$0xff]  ;;  %v5896_v16 = vld [vmem:[#allocation2 + $0x141] sm:$0xff] }
  0x4c   : > { %6768 = vst [vmem:[#allocation15_spill] sm:$0xff] %v5880_v12  ;;  %6770 = vst [vmem:[#allocation17_spill] sm:$0xff] %v5896_v16  ;;  %v5900_v17 = vld [vmem:[#allocation2 + $0x9a] sm:$0xff]  ;;  %v5902_v18 = vld [vmem:[#allocation2 + $0x151] sm:$0xff] }
  0x4d   : > { %6771 = vst [vmem:[#allocation18_spill] sm:$0xff] %v5902_v18  ;;  %v5904_v19 = vld [vmem:[#allocation2 + $0xaa] sm:$0xff]  ;;  %v5912_v20 = vld [vmem:[#allocation2 + $0x159] sm:$0xff]  ;;  %v5920_v23 = vld [vmem:[#allocation2 + $0xc2] sm:$0xff] }
  0x4e   : > { %4916 = vmatmul.mubr.msk.f32.gmra.mrb[8].mxu0 %vm234_vm2, %v5750_v48  ;;  %4719 = vmatmul.mubr.msk.f32.gmra.mrb[10].mxu1 %vm234_vm2, %v5750_v48  ;;  %6772 = vst [vmem:[#allocation19_spill] sm:$0xff] %v5912_v20  ;;  %v5916_v21 = vld [vmem:[#allocation2 + $0xb2] sm:$0xff]  ;;  %v5918_v22 = vld [vmem:[#allocation2 + $0x169] sm:$0xff]  ;;  %v323_v26 = vld [vmem:[#allocation2] sm:$0xff] }
  0x4f   : > { %4918 = vmatprep.mubr.msk.f32.mxu0 %vm234_vm2, %v5754_v49  ;;  %4721 = vmatprep.mubr.msk.f32.mxu1 %vm234_vm2, %v5754_v49  ;;  %6773 = vst [vmem:[#allocation20_spill] sm:$0xff] %v5918_v22  ;;  %v5928_v24 = vld [vmem:[#allocation2 + $0x171] sm:$0xff]  ;;  %v5934_v27 = vld [vmem:[#allocation2 + $0xda] sm:$0xff]  ;;  %v5943_v29 = vld [vmem:[#allocation2 + $0xe2] sm:$0xff] }
  0x50   : > { %6774 = vst [vmem:[#allocation21_spill] sm:$0xff] %v5928_v24  ;;  %v5932_v25 = vld [vmem:[#allocation2 + $0xca] sm:$0xff]  ;;  %v5945_v30 = vld [vmem:[#allocation2 + $0x18] sm:$0xff]  ;;  %v5959_v38 = vld [vmem:[#allocation2 + $0x20] sm:$0xff] }
  0x51   : > { %6775 = vst [vmem:[#allocation22_spill] sm:$0xff] %v5945_v30  ;;  %v5947_v31 = vld [vmem:[#allocation2 + $0xf2] sm:$0xff]  ;;  %6776 = vst [vmem:[#allocation23_spill] sm:$0xff] %v5959_v38  ;;  %v5965_v39 = vld [vmem:[#allocation2 + $0xfa] sm:$0xff] }
  0x52   : > { %4919 = vmatmul.mubr.msk.f32.gmra.mrb[10].mxu0 %vm234_vm2, %v5771_v51  ;;  %4722 = vmatmul.mubr.msk.f32.gmra.mrb[12].mxu1 %vm234_vm2, %v5771_v51  ;;  %v5967_v41 = vld [vmem:[#allocation2 + $0x30] sm:$0xff]  ;;  %v5979_v44 = vld [vmem:[#allocation2 + $0x38] sm:$0xff]  ;;  %v5985_v46 = vld [vmem:[#allocation2 + $0x48] sm:$0xff] }
  0x53   : > { %4921 = vmatprep.mubr.msk.f32.mxu0 %vm234_vm2, %v5773_v52  ;;  %4724 = vmatprep.mubr.msk.f32.mxu1 %vm234_vm2, %v5773_v52  ;;  %6777 = vst [vmem:[#allocation24_spill] sm:$0xff] %v5967_v41  ;;  %v5969_v42 = vld [vmem:[#allocation2 + $0x10a] sm:$0xff]  ;;  %6778 = vst [vmem:[#allocation25_spill] sm:$0xff] %v5979_v44  ;;  %v5983_v45 = vld [vmem:[#allocation2 + $0x112] sm:$0xff] }
  0x54   : > { %6779 = vst [vmem:[#allocation26_spill] sm:$0xff] %v5985_v46  ;;  %v5987_v47 = vld [vmem:[#allocation2 + $0x122] sm:$0xff]  ;;  %v5999_v57 = vld [vmem:[#allocation2 + $0x12a] sm:$0xff] }
  0x55   : > { %v6001_v58 = vld [vmem:[#allocation2 + $0x60] sm:$0xff] }
  0x56   : > { %4922 = vmatmul.mubr.msk.f32.gmra.mrb[12].mxu0 %vm234_vm2, %v5783_v53  ;;  %4725 = vmatmul.mubr.msk.f32.gmra.mrb[14].mxu1 %vm234_vm2, %v5783_v53  ;;  %6781 = vst [vmem:[#allocation28_spill] sm:$0xff] %v6001_v58 }
  0x57   : > { %4924 = vmatprep.mubr.msk.f32.mxu0 %vm234_vm2, %v5785_v54  ;;  %4727 = vmatprep.mubr.msk.f32.mxu1 %vm234_vm2, %v5785_v54 }
  0x5a   : > { %4925 = vmatmul.mubr.msk.f32.gmra.mrb[14].mxu0 %vm234_vm2, %v5795_v55  ;;  %4728 = vmatmul.mubr.msk.f32.gmra.mrb[16].mxu1 %vm234_vm2, %v5795_v55 }
  0x5b   : > { %4953 = vmatprep.mubr.msk.f32.mxu0 %vm234_vm2, %v5797_v56  ;;  %4730 = vmatprep.mubr.msk.f32.mxu1 %vm234_vm2, %v5813_v60 }
  0x5e   : > { %4954 = vmatmul.mubr.msk.f32.vlgmr.msra.gmra.mrb[0].mxu0 %vm234_vm2, %v5811_v59  ;;  %4731 = vmatmul.mubr.msk.f32.gmra.mrb[18].mxu1 %vm234_vm2, %v5828_v63  ;;  %v6073_v63 = vld [vmem:[#allocation2 + $0xc8] sm:$0xff] }
  0x5f   : > { %5002 = vmatpush3.msk.msra.mxu0 %vm486_vm1, %v5690_v33  ;;  %4956 = vmatprep.mubr.msk.f32.mxu0 %vm234_vm2, %v5815_v61  ;;  %v5953_v33 = vld [vmem:[%s6713_s1 + $0xc] sm:$0xf] }
  0x60   : > { %5051 = vmatprep.subr.msk.mxu0 %vm486_vm1, %v5822_v62  ;;  %4733 = vmatprep.mubr.msk.f32.mxu1 %vm234_vm2, %v5836_v1  ;;  %v6063_v1 = vld [vmem:[#allocation2 + $0x18a] sm:$0xff] }
  0x61   : > { %6791 = vst [vmem:[#allocation38_spill] sm:$0xff] %v6063_v1 }
  0x62   : > { %4957 = vmatmul.mubr.msk.f32.gmra.mrb[2].mxu0 %vm234_vm2, %v5834_v0  ;;  %4734 = vmatmul.mubr.msk.f32.gmra.mrb[20].mxu1 %vm234_vm2, %v5848_v4  ;;  %v6051_v4 = vld [vmem:[#allocation2 + $0x182] sm:$0xff] }
  0x63   : > { %4959 = vmatprep.mubr.msk.f32.mxu0 %vm234_vm2, %v5838_v3  ;;  %4736 = vmatprep.mubr.msk.f32.mxu1 %vm234_vm2, %v5854_v6  ;;  %v6049_v6 = vld [vmem:[#allocation2 + $0xa8] sm:$0xff]  ;;  %6789 = vst [vmem:[#allocation36_spill] sm:$0xff] %v6051_v4 }
  0x64   : > { %6788 = vst [vmem:[#allocation35_spill] sm:$0xff] %v6049_v6 }
  0x66   : > { %4960 = vmatmul.mubr.msk.f32.gmra.mrb[4].mxu0 %vm234_vm2, %v5852_v5  ;;  %4737 = vmatmul.mubr.msk.f32.gmra.mrb[22].mxu1 %vm234_vm2, %v5864_v8  ;;  %v6047_v8 = vld [vmem:[#allocation2 + $0x172] sm:$0xff] }
  0x67   : > { %4962 = vmatprep.mubr.msk.f32.mxu0 %vm234_vm2, %v5856_v7  ;;  %4739 = vmatprep.mubr.msk.f32.mxu1 %vm234_vm2, %v5870_v10  ;;  %v6043_v10 = vld [vmem:[#allocation2 + $0x98] sm:$0xff]  ;;  %6787 = vst [vmem:[#allocation34_spill] sm:$0xff] %v6047_v8 }
  0x68   : > { %6786 = vst [vmem:[#allocation33_spill] sm:$0xff] %v6043_v10 }
  0x6a   : > { %4963 = vmatmul.mubr.msk.f32.gmra.mrb[6].mxu0 %vm234_vm2, %v5868_v9  ;;  %4740 = vmatmul.mubr.msk.f32.gmra.mrb[24].mxu1 %vm234_vm2, %v5880_v12  ;;  %v6035_v12 = vld [vmem:[#allocation2 + $0x16a] sm:$0xff] }
  0x6b   : > { %4965 = vmatprep.mubr.msk.f32.mxu0 %vm234_vm2, %v5872_v11  ;;  %4742 = vmatprep.mubr.msk.f32.mxu1 %vm234_vm2, %v5886_v14  ;;  %v6033_v14 = vld [vmem:[#allocation2 + $0x90] sm:$0xff] }
  0x6c   : > { %6785 = vst [vmem:[#allocation32_spill] sm:$0xff] %v6033_v14 }
  0x6e   : > { %4966 = vmatmul.mubr.msk.f32.gmra.mrb[8].mxu0 %vm234_vm2, %v5884_v13  ;;  %4743 = vmatmul.mubr.msk.f32.gmra.mrb[26].mxu1 %vm234_vm2, %v5896_v16  ;;  %v6031_v16 = vld [vmem:[#allocation2 + $0x15a] sm:$0xff] }
  0x6f   : > { %4968 = vmatprep.mubr.msk.f32.mxu0 %vm234_vm2, %v5888_v15  ;;  %4745 = vmatprep.mubr.msk.f32.mxu1 %vm234_vm2, %v5902_v18  ;;  %v6027_v18 = vld [vmem:[#allocation2 + $0x80] sm:$0xff] }
  0x70   : > { %6784 = vst [vmem:[#allocation31_spill] sm:$0xff] %v6027_v18 }
  0x72   : > { %4969 = vmatmul.mubr.msk.f32.gmra.mrb[10].mxu0 %vm234_vm2, %v5900_v17  ;;  %4746 = vmatmul.mubr.msk.f32.gmra.mrb[28].mxu1 %vm234_vm2, %v5912_v20  ;;  %v6019_v20 = vld [vmem:[#allocation2 + $0x152] sm:$0xff] }
  0x73   : > { %4971 = vmatprep.mubr.msk.f32.mxu0 %vm234_vm2, %v5904_v19  ;;  %4748 = vmatprep.mubr.msk.f32.mxu1 %vm234_vm2, %v5918_v22  ;;  %v6017_v22 = vld [vmem:[#allocation2 + $0x78] sm:$0xff] }
  0x74   : > { %6783 = vst [vmem:[#allocation30_spill] sm:$0xff] %v6017_v22 }
  0x76   : > { %4972 = vmatmul.mubr.msk.f32.gmra.mrb[12].mxu0 %vm234_vm2, %v5916_v21  ;;  %4749 = vmatmul.mubr.msk.f32.gmra.mrb[30].mxu1 %vm234_vm2, %v5928_v24  ;;  %v6015_v24 = vld [vmem:[#allocation2 + $0x142] sm:$0xff] }
  0x77   : > { %4974 = vmatprep.mubr.msk.f32.mxu0 %vm234_vm2, %v5920_v23  ;;  %4753 = vmatprep.mubr.msk.f32.mxu1 %vm234_vm2, %v323_v26  ;;  %v6003_v26 = vld [vmem:[#allocation2 + $0x13a] sm:$0xff] }
  0x7a   : > { %4975 = vmatmul.mubr.msk.f32.gmra.mrb[14].mxu0 %vm234_vm2, %v5932_v25  ;;  %4754 = vmatmul.mubr.msk.f32.vlgmr.msra.gmra.mrb[0].mxu1 %vm234_vm2, %v324_v28  ;;  %v6011_v28 = vld [vmem:[#allocation2 + $0x68] sm:$0xff] }
  0x7b   : > { %4977 = vmatprep.mubr.msk.f32.mxu0 %vm234_vm2, %v5934_v27  ;;  %4802 = vmatpush3.msk.msra.mxu1 %vm486_vm1, %v5759_v50  ;;  %v5995_v50 = vld [vmem:[#allocation2 + $0x50] sm:$0xff]  ;;  %6782 = vst [vmem:[#allocation29_spill] sm:$0xff] %v6011_v28 }
  0x7c   : > { %4756 = vmatprep.mubr.msk.f32.mxu1 %vm234_vm2, %v5945_v30  ;;  %4851 = vmatprep.subr.msk.mxu1 %vm486_vm1, %v5953_v33  ;;  %6780 = vst [vmem:[#allocation27_spill] sm:$0xff] %v5995_v50  ;;  %v6065_v30 = vld [vmem:[#allocation2 + $0xc0] sm:$0xff] }
  0x7d   : > { %6792 = vst [vmem:[#allocation39_spill] sm:$0xff] %v6065_v30 }
  0x7e   : > { %4978 = vmatmul.mubr.msk.f32.gmra.mrb[16].mxu0 %vm234_vm2, %v5943_v29  ;;  %4757 = vmatmul.mubr.msk.f32.gmra.mrb[2].mxu1 %vm234_vm2, %v5959_v38  ;;  %v6059_v38 = vld [vmem:[#allocation2 + $0xb0] sm:$0xff] }
  0x7f   : > { %4980 = vmatprep.mubr.msk.f32.mxu0 %vm234_vm2, %v5947_v31  ;;  %4759 = vmatprep.mubr.msk.f32.mxu1 %vm234_vm2, %v5967_v41  ;;  %6790 = vst [vmem:[#allocation37_spill] sm:$0xff] %v6059_v38 }
  0x82   : > { %4981 = vmatmul.mubr.msk.f32.gmra.mrb[18].mxu0 %vm234_vm2, %v5965_v39  ;;  %4760 = vmatmul.mubr.msk.f32.gmra.mrb[4].mxu1 %vm234_vm2, %v5979_v44 }
  0x83   : > { %4983 = vmatprep.mubr.msk.f32.mxu0 %vm234_vm2, %v5969_v42  ;;  %4762 = vmatprep.mubr.msk.f32.mxu1 %vm234_vm2, %v5985_v46 }
  0x86   : > { %4984 = vmatmul.mubr.msk.f32.gmra.mrb[20].mxu0 %vm234_vm2, %v5983_v45  ;;  %4763 = vmatmul.mubr.msk.f32.gmra.mrb[6].mxu1 %vm234_vm2, %v5995_v50 }
  0x87   : > { %4986 = vmatprep.mubr.msk.f32.mxu0 %vm234_vm2, %v5987_v47  ;;  %4765 = vmatprep.mubr.msk.f32.mxu1 %vm234_vm2, %v6001_v58 }
  0x8a   : > { %4987 = vmatmul.mubr.msk.f32.gmra.mrb[22].mxu0 %vm234_vm2, %v5999_v57  ;;  %4766 = vmatmul.mubr.msk.f32.gmra.mrb[8].mxu1 %vm234_vm2, %v6011_v28 }
  0x8b   : > { %4989 = vmatprep.mubr.msk.f32.mxu0 %vm234_vm2, %v6003_v26  ;;  %4768 = vmatprep.mubr.msk.f32.mxu1 %vm234_vm2, %v6017_v22 }
  0x8e   : > { %4990 = vmatmul.mubr.msk.f32.gmra.mrb[24].mxu0 %vm234_vm2, %v6015_v24  ;;  %4769 = vmatmul.mubr.msk.f32.gmra.mrb[10].mxu1 %vm234_vm2, %v6027_v18 }
  0x8f   : > { %4992 = vmatprep.mubr.msk.f32.mxu0 %vm234_vm2, %v6019_v20  ;;  %4771 = vmatprep.mubr.msk.f32.mxu1 %vm234_vm2, %v6033_v14 }
  0x92   : > { %4993 = vmatmul.mubr.msk.f32.gmra.mrb[26].mxu0 %vm234_vm2, %v6031_v16  ;;  %4772 = vmatmul.mubr.msk.f32.gmra.mrb[12].mxu1 %vm234_vm2, %v6043_v10 }
  0x93   : > { %4995 = vmatprep.mubr.msk.f32.mxu0 %vm234_vm2, %v6035_v12  ;;  %4774 = vmatprep.mubr.msk.f32.mxu1 %vm234_vm2, %v6049_v6 }
  0x96   : > { %4996 = vmatmul.mubr.msk.f32.gmra.mrb[28].mxu0 %vm234_vm2, %v6047_v8  ;;  %4775 = vmatmul.mubr.msk.f32.gmra.mrb[14].mxu1 %vm234_vm2, %v6059_v38  ;;  %v6077_v8 = vld [vmem:[#allocation2 + $0xd8] sm:$0xff] }
  0x97   : > { %4998 = vmatprep.mubr.msk.f32.mxu0 %vm234_vm2, %v6051_v4  ;;  %4777 = vmatprep.mubr.msk.f32.mxu1 %vm234_vm2, %v6065_v30  ;;  %v6084_v4 = vld [vmem:[%s6713_s1 + $0x20] sm:$0xf] }
  0x9a   : > { %4999 = vmatmul.mubr.msk.f32.gmra.mrb[30].mxu0 %vm234_vm2, %v6063_v1  ;;  %4778 = vmatmul.mubr.msk.f32.gmra.mrb[16].mxu1 %vm234_vm2, %v6073_v63  ;;  %v6090_v1 = vld [vmem:[#allocation2 + $0xe0] sm:$0xff] }
  0x9b   : > { %5003 = vmatprep.mubr.msk.f32.mxu0 %vm234_vm2, %v5967_v41  ;;  %4780 = vmatprep.mubr.msk.f32.mxu1 %vm234_vm2, %v6077_v8  ;;  %v6096_v41 = vld [vmem:[#allocation2 + $0xf0] sm:$0xff] }
  0x9e   : > { %5004 = vmatmul.mubr.msk.f32.vlgmr.msra.gmra.mrb[0].mxu0 %vm234_vm2, %v5979_v44  ;;  %4781 = vmatmul.mubr.msk.f32.gmra.mrb[18].mxu1 %vm234_vm2, %v6090_v1  ;;  %v6106_v44 = vld [vmem:[#allocation2 + $0xf8] sm:$0xff] }
  0x9f   : > { %5052 = vmatpush3.msk.msra.mxu0 %vm486_vm1, %v5822_v62  ;;  %5006 = vmatprep.mubr.msk.f32.mxu0 %vm234_vm2, %v5985_v46  ;;  %v6110_v62 = vld [vmem:[#allocation2 + $0x108] sm:$0xff]  ;;  %v6122_v46 = vld [vmem:[#allocation2 + $0x120] sm:$0xff] }
  0xa0   : > { %5101 = vmatprep.subr.msk.mxu0 %vm486_vm1, %v6084_v4  ;;  %4783 = vmatprep.mubr.msk.f32.mxu1 %vm234_vm2, %v6096_v41 }
  0xa2   : > { %5007 = vmatmul.mubr.msk.f32.gmra.mrb[2].mxu0 %vm234_vm2, %v5995_v50  ;;  %4784 = vmatmul.mubr.msk.f32.gmra.mrb[20].mxu1 %vm234_vm2, %v6106_v44  ;;  %v6118_v50 = vld [vmem:[#allocation2 + $0x110] sm:$0xff] }
  0xa3   : > { %5009 = vmatprep.mubr.msk.f32.mxu0 %vm234_vm2, %v6001_v58  ;;  %4786 = vmatprep.mubr.msk.f32.mxu1 %vm234_vm2, %v6110_v62  ;;  %v6134_v58 = vld [vmem:[#allocation2 + $0x138] sm:$0xff] }
  0xa6   : > { %5010 = vmatmul.mubr.msk.f32.gmra.mrb[4].mxu0 %vm234_vm2, %v6011_v28  ;;  %4787 = vmatmul.mubr.msk.f32.gmra.mrb[22].mxu1 %vm234_vm2, %v6118_v50  ;;  %v6130_v28 = vld [vmem:[#allocation2 + $0x128] sm:$0xff] }
  0xa7   : > { %5012 = vmatprep.mubr.msk.f32.mxu0 %vm234_vm2, %v6017_v22  ;;  %4789 = vmatprep.mubr.msk.f32.mxu1 %vm234_vm2, %v6122_v46  ;;  %v6146_v22 = vld [vmem:[#allocation2 + $0x150] sm:$0xff] }
  0xaa   : > { %5013 = vmatmul.mubr.msk.f32.gmra.mrb[6].mxu0 %vm234_vm2, %v6027_v18  ;;  %4790 = vmatmul.mubr.msk.f32.gmra.mrb[24].mxu1 %vm234_vm2, %v6130_v28  ;;  %v6142_v18 = vld [vmem:[#allocation2 + $0x140] sm:$0xff] }
  0xab   : > { %5015 = vmatprep.mubr.msk.f32.mxu0 %vm234_vm2, %v6033_v14  ;;  %4792 = vmatprep.mubr.msk.f32.mxu1 %vm234_vm2, %v6134_v58  ;;  %v6158_v14 = vld [vmem:[#allocation2 + $0x168] sm:$0xff] }
  0xae   : > { %5016 = vmatmul.mubr.msk.f32.gmra.mrb[8].mxu0 %vm234_vm2, %v6043_v10  ;;  %4793 = vmatmul.mubr.msk.f32.gmra.mrb[26].mxu1 %vm234_vm2, %v6142_v18  ;;  %v6154_v10 = vld [vmem:[#allocation2 + $0x158] sm:$0xff] }
  0xaf   : > { %5018 = vmatprep.mubr.msk.f32.mxu0 %vm234_vm2, %v6049_v6  ;;  %4795 = vmatprep.mubr.msk.f32.mxu1 %vm234_vm2, %v6146_v22  ;;  %v1039_v6 = vld [vmem:[#allocation2 + $0x2] sm:$0xff] }
  0xb2   : > { %5019 = vmatmul.mubr.msk.f32.gmra.mrb[10].mxu0 %vm234_vm2, %v6059_v38  ;;  %4796 = vmatmul.mubr.msk.f32.gmra.mrb[28].mxu1 %vm234_vm2, %v6154_v10  ;;  %v6166_v38 = vld [vmem:[#allocation2 + $0x170] sm:$0xff] }
  0xb3   : > { %5021 = vmatprep.mubr.msk.f32.mxu0 %vm234_vm2, %v6065_v30  ;;  %4798 = vmatprep.mubr.msk.f32.mxu1 %vm234_vm2, %v6158_v14  ;;  %v1040_v30 = vld [vmem:[#allocation2 + $0xa] sm:$0xff] }
  0xb6   : > { %5022 = vmatmul.mubr.msk.f32.gmra.mrb[12].mxu0 %vm234_vm2, %v6073_v63  ;;  %4799 = vmatmul.mubr.msk.f32.gmra.mrb[30].mxu1 %vm234_vm2, %v6166_v38 }
  0xb7   : > { %5024 = vmatprep.mubr.msk.f32.mxu0 %vm234_vm2, %v6077_v8  ;;  %4803 = vmatprep.mubr.msk.f32.mxu1 %vm234_vm2, %v1039_v6  ;;  %v2630_v6 = vld [vmem:[#allocation2 + $0x198] sm:$0xff] }
  0xba   : > { %5025 = vmatmul.mubr.msk.f32.gmra.mrb[14].mxu0 %vm234_vm2, %v6090_v1  ;;  %4804 = vmatmul.mubr.msk.f32.vlgmr.msra.gmra.mrb[0].mxu1 %vm234_vm2, %v1040_v30  ;;  %v2631_v30 = vld [vmem:[#allocation2 + $0x1a0] sm:$0xff] }
  0xbb   : > { %5027 = vmatprep.mubr.msk.f32.mxu0 %vm234_vm2, %v6096_v41  ;;  %4852 = vmatpush3.msk.msra.mxu1 %vm486_vm1, %v5953_v33  ;;  %v6809_v33 = vld [vmem:[#allocation29_spill] sm:$0xff] }
  0xbc   : > { %4806 = vmatprep.mubr.msk.f32.mxu1 %vm234_vm2, %v5797_v56  ;;  %5151 = vmatprep.subr.msk.mxu1 %vm486_vm1, %v5559_v2  ;;  %v6220_v56 = vld [vmem:[#allocation2 + $0x180] sm:$0xff] }
  0xbe   : > { %5028 = vmatmul.mubr.msk.f32.gmra.mrb[16].mxu0 %vm234_vm2, %v6106_v44  ;;  %4807 = vmatmul.mubr.msk.f32.gmra.mrb[2].mxu1 %vm234_vm2, %v5811_v59  ;;  %v6230_v59 = vld [vmem:[#allocation2 + $0x188] sm:$0xff] }
  0xbf   : > { %5030 = vmatprep.mubr.msk.f32.mxu0 %vm234_vm2, %v6110_v62  ;;  %4809 = vmatprep.mubr.msk.f32.mxu1 %vm234_vm2, %v5815_v61 }
  0xc2   : > { %5031 = vmatmul.mubr.msk.f32.gmra.mrb[18].mxu0 %vm234_vm2, %v6118_v50  ;;  %4810 = vmatmul.mubr.msk.f32.gmra.mrb[4].mxu1 %vm234_vm2, %v5834_v0 }
  0xc3   : > { %5033 = vmatprep.mubr.msk.f32.mxu0 %vm234_vm2, %v6122_v46  ;;  %4812 = vmatprep.mubr.msk.f32.mxu1 %vm234_vm2, %v5838_v3 }
  0xc6   : > { %5034 = vmatmul.mubr.msk.f32.gmra.mrb[20].mxu0 %vm234_vm2, %v6130_v28  ;;  %4813 = vmatmul.mubr.msk.f32.gmra.mrb[6].mxu1 %vm234_vm2, %v5852_v5 }
  0xc7   : > { %5036 = vmatprep.mubr.msk.f32.mxu0 %vm234_vm2, %v6134_v58  ;;  %4815 = vmatprep.mubr.msk.f32.mxu1 %vm234_vm2, %v5856_v7 }
  0xca   : > { %5037 = vmatmul.mubr.msk.f32.gmra.mrb[22].mxu0 %vm234_vm2, %v6142_v18  ;;  %4816 = vmatmul.mubr.msk.f32.gmra.mrb[8].mxu1 %vm234_vm2, %v5868_v9 }
  0xcb   : > { %5039 = vmatprep.mubr.msk.f32.mxu0 %vm234_vm2, %v6146_v22  ;;  %4818 = vmatprep.mubr.msk.f32.mxu1 %vm234_vm2, %v5872_v11 }
  0xce   : > { %5040 = vmatmul.mubr.msk.f32.gmra.mrb[24].mxu0 %vm234_vm2, %v6154_v10  ;;  %4819 = vmatmul.mubr.msk.f32.gmra.mrb[10].mxu1 %vm234_vm2, %v5884_v13 }
  0xcf   : > { %5042 = vmatprep.mubr.msk.f32.mxu0 %vm234_vm2, %v6158_v14  ;;  %4821 = vmatprep.mubr.msk.f32.mxu1 %vm234_vm2, %v5888_v15 }
  0xd2   : > { %5043 = vmatmul.mubr.msk.f32.gmra.mrb[26].mxu0 %vm234_vm2, %v6166_v38  ;;  %4822 = vmatmul.mubr.msk.f32.gmra.mrb[12].mxu1 %vm234_vm2, %v5900_v17 }
  0xd3   : > { %5045 = vmatprep.mubr.msk.f32.mxu0 %vm234_vm2, %v6220_v56  ;;  %4824 = vmatprep.mubr.msk.f32.mxu1 %vm234_vm2, %v5904_v19 }
  0xd6   : > { %5046 = vmatmul.mubr.msk.f32.gmra.mrb[28].mxu0 %vm234_vm2, %v6230_v59  ;;  %4825 = vmatmul.mubr.msk.f32.gmra.mrb[14].mxu1 %vm234_vm2, %v5916_v21 }
  0xd7   : > { %5048 = vmatprep.mubr.msk.f32.mxu0 %vm234_vm2, %v2630_v6  ;;  %4827 = vmatprep.mubr.msk.f32.mxu1 %vm234_vm2, %v5920_v23  ;;  %v6810_v6 = vld [vmem:[#allocation17_spill] sm:$0xff] }
  0xda   : > { %5049 = vmatmul.mubr.msk.f32.gmra.mrb[30].mxu0 %vm234_vm2, %v2631_v30  ;;  %4828 = vmatmul.mubr.msk.f32.gmra.mrb[16].mxu1 %vm234_vm2, %v5932_v25  ;;  %v6811_v30 = vld [vmem:[#allocation30_spill] sm:$0xff] }
  0xdb   : > { %5053 = vmatprep.mubr.msk.f32.mxu0 %vm234_vm2, %v5685_v32  ;;  %4830 = vmatprep.mubr.msk.f32.mxu1 %vm234_vm2, %v5934_v27  ;;  %v6793_v32 = vld [vmem:[#allocation34_spill] sm:$0xff] }
  0xde   : > { %5054 = vmatmul.mubr.msk.f32.vlgmr.msra.gmra.mrb[0].mxu0 %vm234_vm2, %v5697_v34  ;;  %4831 = vmatmul.mubr.msk.f32.gmra.mrb[18].mxu1 %vm234_vm2, %v5943_v29  ;;  %v6794_v34 = vld [vmem:[#allocation9_spill] sm:$0xff] }
  0xdf   : > { %5102 = vmatpush3.msk.msra.mxu0 %vm486_vm1, %v6084_v4  ;;  %5056 = vmatprep.mubr.msk.f32.mxu0 %vm234_vm2, %v5701_v35  ;;  %v6795_v35 = vld [vmem:[#allocation22_spill] sm:$0xff]  ;;  %v6808_v4 = vld [vmem:[#allocation16_spill] sm:$0xff] }
  0xe0   : > { %4833 = vmatprep.mubr.msk.f32.mxu1 %vm234_vm2, %v5947_v31 }
  0xe2   : > { %5057 = vmatmul.mubr.msk.f32.gmra.mrb[2].mxu0 %vm234_vm2, %v5712_v36  ;;  %4834 = vmatmul.mubr.msk.f32.gmra.mrb[20].mxu1 %vm234_vm2, %v5965_v39  ;;  %v6796_v36 = vld [vmem:[#allocation10_spill] sm:$0xff] }
  0xe3   : > { %5059 = vmatprep.mubr.msk.f32.mxu0 %vm234_vm2, %v5714_v37  ;;  %4836 = vmatprep.mubr.msk.f32.mxu1 %vm234_vm2, %v5969_v42  ;;  %v6797_v37 = vld [vmem:[#allocation23_spill] sm:$0xff] }
  0xe6   : > { %5060 = vmatmul.mubr.msk.f32.gmra.mrb[4].mxu0 %vm234_vm2, %v5726_v40  ;;  %4837 = vmatmul.mubr.msk.f32.gmra.mrb[22].mxu1 %vm234_vm2, %v5983_v45  ;;  %v6798_v40 = vld [vmem:[#allocation11_spill] sm:$0xff] }
  0xe7   : > { %5062 = vmatprep.mubr.msk.f32.mxu0 %vm234_vm2, %v5732_v43  ;;  %4839 = vmatprep.mubr.msk.f32.mxu1 %vm234_vm2, %v5987_v47  ;;  %v6799_v43 = vld [vmem:[#allocation24_spill] sm:$0xff] }
  0xea   : > { %5063 = vmatmul.mubr.msk.f32.gmra.mrb[6].mxu0 %vm234_vm2, %v5750_v48  ;;  %4840 = vmatmul.mubr.msk.f32.gmra.mrb[24].mxu1 %vm234_vm2, %v5999_v57  ;;  %v6800_v48 = vld [vmem:[#allocation12_spill] sm:$0xff] }
  0xeb   : > { %5065 = vmatprep.mubr.msk.f32.mxu0 %vm234_vm2, %v5754_v49  ;;  %4842 = vmatprep.mubr.msk.f32.mxu1 %vm234_vm2, %v6003_v26  ;;  %v6801_v49 = vld [vmem:[#allocation25_spill] sm:$0xff] }
  0xee   : > { %5066 = vmatmul.mubr.msk.f32.gmra.mrb[8].mxu0 %vm234_vm2, %v5771_v51  ;;  %4843 = vmatmul.mubr.msk.f32.gmra.mrb[26].mxu1 %vm234_vm2, %v6015_v24  ;;  %v6802_v51 = vld [vmem:[#allocation13_spill] sm:$0xff] }
  0xef   : > { %5068 = vmatprep.mubr.msk.f32.mxu0 %vm234_vm2, %v5773_v52  ;;  %4845 = vmatprep.mubr.msk.f32.mxu1 %vm234_vm2, %v6019_v20  ;;  %v6803_v52 = vld [vmem:[#allocation26_spill] sm:$0xff] }
  0xf2   : > { %5069 = vmatmul.mubr.msk.f32.gmra.mrb[10].mxu0 %vm234_vm2, %v5783_v53  ;;  %4846 = vmatmul.mubr.msk.f32.gmra.mrb[28].mxu1 %vm234_vm2, %v6031_v16  ;;  %v6804_v53 = vld [vmem:[#allocation14_spill] sm:$0xff] }
  0xf3   : > { %5071 = vmatprep.mubr.msk.f32.mxu0 %vm234_vm2, %v5785_v54  ;;  %4848 = vmatprep.mubr.msk.f32.mxu1 %vm234_vm2, %v6035_v12  ;;  %v6806_v54 = vld [vmem:[#allocation15_spill] sm:$0xff] }
  0xf6   : > { %5072 = vmatmul.mubr.msk.f32.gmra.mrb[12].mxu0 %vm234_vm2, %v5795_v55  ;;  %4849 = vmatmul.mubr.msk.f32.gmra.mrb[30].mxu1 %vm234_vm2, %v6793_v32  ;;  %v6807_v55 = vld [vmem:[#allocation28_spill] sm:$0xff]  ;;  %v6820_v32 = vld [vmem:[#allocation37_spill] sm:$0xff] }
  0xf7   : > { %5074 = vmatprep.mubr.msk.f32.mxu0 %vm234_vm2, %v5813_v60  ;;  %4853 = vmatprep.mubr.msk.f32.mxu1 %vm234_vm2, %v6795_v35  ;;  %v6812_v35 = vld [vmem:[#allocation18_spill] sm:$0xff] }
  0xfa   : > { %5075 = vmatmul.mubr.msk.f32.gmra.mrb[14].mxu0 %vm234_vm2, %v6794_v34  ;;  %4854 = vmatmul.mubr.msk.f32.vlgmr.msra.gmra.mrb[0].mxu1 %vm234_vm2, %v6797_v37  ;;  %v6813_v37 = vld [vmem:[#allocation31_spill] sm:$0xff] }
  0xfb   : > { %5077 = vmatprep.mubr.msk.f32.mxu0 %vm234_vm2, %v6796_v36  ;;  %5152 = vmatpush3.msk.msra.mxu1 %vm486_vm1, %v5559_v2  ;;  %v6805_v2 = vld [vmem:[#allocation27_spill] sm:$0xff] }
  0xfc   : > { %4856 = vmatprep.mubr.msk.f32.mxu1 %vm234_vm2, %v6799_v43  ;;  %v6814_v43 = vld [vmem:[#allocation19_spill] sm:$0xff] }
  0xfe   : > { %5078 = vmatmul.mubr.msk.f32.gmra.mrb[16].mxu0 %vm234_vm2, %v6798_v40  ;;  %4857 = vmatmul.mubr.msk.f32.gmra.mrb[2].mxu1 %vm234_vm2, %v6801_v49  ;;  %v6815_v49 = vld [vmem:[#allocation32_spill] sm:$0xff] }
  0xff   : > { %5080 = vmatprep.mubr.msk.f32.mxu0 %vm234_vm2, %v6800_v48  ;;  %4859 = vmatprep.mubr.msk.f32.mxu1 %vm234_vm2, %v6803_v52  ;;  %v6816_v52 = vld [vmem:[#allocation20_spill] sm:$0xff] }
 0x102   : > { %5081 = vmatmul.mubr.msk.f32.gmra.mrb[18].mxu0 %vm234_vm2, %v6802_v51  ;;  %4860 = vmatmul.mubr.msk.f32.gmra.mrb[4].mxu1 %vm234_vm2, %v6805_v2  ;;  %v6354_v2 = vld [vmem:[#allocation2 + $0x181] sm:$0xff] }
 0x103   : > { %5083 = vmatprep.mubr.msk.f32.mxu0 %vm234_vm2, %v6804_v53  ;;  %4862 = vmatprep.mubr.msk.f32.mxu1 %vm234_vm2, %v6807_v55  ;;  %v6817_v55 = vld [vmem:[#allocation33_spill] sm:$0xff] }
 0x106   : > { %5084 = vmatmul.mubr.msk.f32.gmra.mrb[20].mxu0 %vm234_vm2, %v6806_v54  ;;  %4863 = vmatmul.mubr.msk.f32.gmra.mrb[6].mxu1 %vm234_vm2, %v6809_v33  ;;  %v6818_v33 = vld [vmem:[#allocation21_spill] sm:$0xff] }
 0x107   : > { %5086 = vmatprep.mubr.msk.f32.mxu0 %vm234_vm2, %v6808_v4  ;;  %4865 = vmatprep.mubr.msk.f32.mxu1 %vm234_vm2, %v6811_v30  ;;  %v6819_v30 = vld [vmem:[#allocation35_spill] sm:$0xff] }
 0x10a   : > { %5087 = vmatmul.mubr.msk.f32.gmra.mrb[22].mxu0 %vm234_vm2, %v6810_v6  ;;  %4866 = vmatmul.mubr.msk.f32.gmra.mrb[8].mxu1 %vm234_vm2, %v6813_v37  ;;  %v6364_v37 = vld [vmem:[#allocation2 + $0x189] sm:$0xff] }
 0x10b   : > { %5089 = vmatprep.mubr.msk.f32.mxu0 %vm234_vm2, %v6812_v35  ;;  %4868 = vmatprep.mubr.msk.f32.mxu1 %vm234_vm2, %v6815_v49  ;;  %v3020_v49 = vld [vmem:[#allocation2 + $0x199] sm:$0xff] }
 0x10e   : > { %5090 = vmatmul.mubr.msk.f32.gmra.mrb[24].mxu0 %vm234_vm2, %v6814_v43  ;;  %4869 = vmatmul.mubr.msk.f32.gmra.mrb[10].mxu1 %vm234_vm2, %v6817_v55  ;;  %v3021_v55 = vld [vmem:[#allocation2 + $0x1a1] sm:$0xff] }
 0x10f   : > { %5092 = vmatprep.mubr.msk.f32.mxu0 %vm234_vm2, %v6816_v52  ;;  %4871 = vmatprep.mubr.msk.f32.mxu1 %vm234_vm2, %v6819_v30  ;;  %v6821_v52 = vld [vmem:[#allocation39_spill] sm:$0xff] }
 0x112   : > { %5093 = vmatmul.mubr.msk.f32.gmra.mrb[26].mxu0 %vm234_vm2, %v6818_v33  ;;  %4872 = vmatmul.mubr.msk.f32.gmra.mrb[12].mxu1 %vm234_vm2, %v6820_v32 }
 0x113   : > { %5095 = vmatprep.mubr.msk.f32.mxu0 %vm234_vm2, %v6354_v2  ;;  %4874 = vmatprep.mubr.msk.f32.mxu1 %vm234_vm2, %v6821_v52 }
 0x116   : > { %5096 = vmatmul.mubr.msk.f32.gmra.mrb[28].mxu0 %vm234_vm2, %v6364_v37  ;;  %4875 = vmatmul.mubr.msk.f32.gmra.mrb[14].mxu1 %vm234_vm2, %v6073_v63  ;;  %v6824_v63 = vld [vmem:[#allocation36_spill] sm:$0xff] }
 0x117   : > { %5098 = vmatprep.mubr.msk.f32.mxu0 %vm234_vm2, %v3020_v49  ;;  %4877 = vmatprep.mubr.msk.f32.mxu1 %vm234_vm2, %v6077_v8 }
 0x11a   : > { %5099 = vmatmul.mubr.msk.f32.gmra.mrb[30].mxu0 %vm234_vm2, %v3021_v55  ;;  %4878 = vmatmul.mubr.msk.f32.gmra.mrb[16].mxu1 %vm234_vm2, %v6090_v1  ;;  %v6825_v1 = vld [vmem:[#allocation38_spill] sm:$0xff] }
 0x11b   : > { %5103 = vmatprep.mubr.msk.f32.mxu0 %vm234_vm2, %v5815_v61  ;;  %4880 = vmatprep.mubr.msk.f32.mxu1 %vm234_vm2, %v6096_v41  ;;  %v6823_v61 = vld [vmem:[#allocation20_spill] sm:$0xff] }
 0x11e   : > { %5104 = vmatmul.mubr.msk.f32.vlgmr.msra.gmra.mrb[0].mxu0 %vm234_vm2, %v5834_v0  ;;  %4881 = vmatmul.mubr.msk.f32.gmra.mrb[18].mxu1 %vm234_vm2, %v6106_v44  ;;  %v3410_v0 = vld [vmem:[#allocation2 + $0x19a] sm:$0xff] }
 0x11f   : > { %5106 = vmatprep.mubr.msk.f32.mxu0 %vm234_vm2, %v5838_v3  ;;  %4883 = vmatprep.mubr.msk.f32.mxu1 %vm234_vm2, %v6110_v62  ;;  %v3411_v3 = vld [vmem:[#allocation2 + $0x1a2] sm:$0xff] }
 0x122   : > { %5107 = vmatmul.mubr.msk.f32.gmra.mrb[2].mxu0 %vm234_vm2, %v5852_v5  ;;  %4884 = vmatmul.mubr.msk.f32.gmra.mrb[20].mxu1 %vm234_vm2, %v6118_v50 }
 0x123   : > { %5109 = vmatprep.mubr.msk.f32.mxu0 %vm234_vm2, %v5856_v7  ;;  %4886 = vmatprep.mubr.msk.f32.mxu1 %vm234_vm2, %v6122_v46 }
 0x126   : > { %5110 = vmatmul.mubr.msk.f32.gmra.mrb[4].mxu0 %vm234_vm2, %v5868_v9  ;;  %4887 = vmatmul.mubr.msk.f32.gmra.mrb[22].mxu1 %vm234_vm2, %v6130_v28 }
 0x127   : > { %5112 = vmatprep.mubr.msk.f32.mxu0 %vm234_vm2, %v5872_v11  ;;  %4889 = vmatprep.mubr.msk.f32.mxu1 %vm234_vm2, %v6134_v58 }
 0x12a   : > { %5113 = vmatmul.mubr.msk.f32.gmra.mrb[6].mxu0 %vm234_vm2, %v5884_v13  ;;  %4890 = vmatmul.mubr.msk.f32.gmra.mrb[24].mxu1 %vm234_vm2, %v6142_v18 }
 0x12b   : > { %5115 = vmatprep.mubr.msk.f32.mxu0 %vm234_vm2, %v5888_v15  ;;  %4892 = vmatprep.mubr.msk.f32.mxu1 %vm234_vm2, %v6146_v22 }
 0x12e   : > { %5116 = vmatmul.mubr.msk.f32.gmra.mrb[8].mxu0 %vm234_vm2, %v5900_v17  ;;  %4893 = vmatmul.mubr.msk.f32.gmra.mrb[26].mxu1 %vm234_vm2, %v6154_v10 }
 0x12f   : > { %5118 = vmatprep.mubr.msk.f32.mxu0 %vm234_vm2, %v5904_v19  ;;  %4895 = vmatprep.mubr.msk.f32.mxu1 %vm234_vm2, %v6158_v14 }
 0x132   : > { %5119 = vmatmul.mubr.msk.f32.gmra.mrb[10].mxu0 %vm234_vm2, %v5916_v21  ;;  %4896 = vmatmul.mubr.msk.f32.gmra.mrb[28].mxu1 %vm234_vm2, %v6166_v38 }
 0x133   : > { %5121 = vmatprep.mubr.msk.f32.mxu0 %vm234_vm2, %v5920_v23  ;;  %4898 = vmatprep.mubr.msk.f32.mxu1 %vm234_vm2, %v6220_v56 }
 0x136   : > { %5122 = vmatmul.mubr.msk.f32.gmra.mrb[12].mxu0 %vm234_vm2, %v5932_v25  ;;  %4899 = vmatmul.mubr.msk.f32.gmra.mrb[30].mxu1 %vm234_vm2, %v6230_v59 }
 0x137   : > { %5124 = vmatprep.mubr.msk.f32.mxu0 %vm234_vm2, %v5934_v27  ;;  %4927 = vmatprep.mubr.msk.f32.mxu1 %vm234_vm2, %v5813_v60  ;;  %v6822_v60 = vld [vmem:[#allocation34_spill] sm:$0xff] }
 0x13a   : > { %5125 = vmatmul.mubr.msk.f32.gmra.mrb[14].mxu0 %vm234_vm2, %v5943_v29  ;;  %4928 = vmatmul.mubr.msk.f32.vlgmr.msra.gmra.mrb[16].mxu1 %vm234_vm2, %v6794_v34 }
 0x13b   : > { %5127 = vmatprep.mubr.msk.f32.mxu0 %vm234_vm2, %v5947_v31  ;;  %4930 = vmatprep.mubr.msk.f32.mxu1 %vm234_vm2, %v6796_v36 }
 0x13e   : > { %5128 = vmatmul.mubr.msk.f32.gmra.mrb[16].mxu0 %vm234_vm2, %v5965_v39  ;;  %4931 = vmatmul.mubr.msk.f32.gmra.mrb[18].mxu1 %vm234_vm2, %v6798_v40 }
 0x13f   : > { %5130 = vmatprep.mubr.msk.f32.mxu0 %vm234_vm2, %v5969_v42  ;;  %4933 = vmatprep.mubr.msk.f32.mxu1 %vm234_vm2, %v6800_v48 }
 0x142   : > { %5131 = vmatmul.mubr.msk.f32.gmra.mrb[18].mxu0 %vm234_vm2, %v5983_v45  ;;  %4934 = vmatmul.mubr.msk.f32.gmra.mrb[20].mxu1 %vm234_vm2, %v6802_v51 }
 0x143   : > { %5133 = vmatprep.mubr.msk.f32.mxu0 %vm234_vm2, %v5987_v47  ;;  %4936 = vmatprep.mubr.msk.f32.mxu1 %vm234_vm2, %v6804_v53 }
 0x146   : > { %5134 = vmatmul.mubr.msk.f32.gmra.mrb[20].mxu0 %vm234_vm2, %v5999_v57  ;;  %4937 = vmatmul.mubr.msk.f32.gmra.mrb[22].mxu1 %vm234_vm2, %v6806_v54 }
 0x147   : > { %5136 = vmatprep.mubr.msk.f32.mxu0 %vm234_vm2, %v6003_v26  ;;  %4939 = vmatprep.mubr.msk.f32.mxu1 %vm234_vm2, %v6808_v4 }
 0x14a   : > { %5137 = vmatmul.mubr.msk.f32.gmra.mrb[22].mxu0 %vm234_vm2, %v6015_v24  ;;  %4940 = vmatmul.mubr.msk.f32.gmra.mrb[24].mxu1 %vm234_vm2, %v6810_v6 }
 0x14b   : > { %5139 = vmatprep.mubr.msk.f32.mxu0 %vm234_vm2, %v6019_v20  ;;  %4942 = vmatprep.mubr.msk.f32.mxu1 %vm234_vm2, %v6812_v35 }
 0x14e   : > { %5140 = vmatmul.mubr.msk.f32.gmra.mrb[24].mxu0 %vm234_vm2, %v6031_v16  ;;  %4943 = vmatmul.mubr.msk.f32.gmra.mrb[26].mxu1 %vm234_vm2, %v6814_v43 }
 0x14f   : > { %5142 = vmatprep.mubr.msk.f32.mxu0 %vm234_vm2, %v6035_v12  ;;  %4945 = vmatprep.mubr.msk.f32.mxu1 %vm234_vm2, %v6823_v61 }
 0x152   : > { %5143 = vmatmul.mubr.msk.f32.gmra.mrb[26].mxu0 %vm234_vm2, %v6822_v60  ;;  %4946 = vmatmul.mubr.msk.f32.gmra.mrb[28].mxu1 %vm234_vm2, %v6818_v33 }
 0x153   : > { %5145 = vmatprep.mubr.msk.f32.mxu0 %vm234_vm2, %v6824_v63  ;;  %4948 = vmatprep.mubr.msk.f32.mxu1 %vm234_vm2, %v6354_v2 }
 0x156   : > { %5146 = vmatmul.mubr.msk.f32.gmra.mrb[28].mxu0 %vm234_vm2, %v6825_v1  ;;  %4949 = vmatmul.mubr.msk.f32.gmra.mrb[30].mxu1 %vm234_vm2, %v6364_v37 }
 0x157   : > { %5148 = vmatprep.mubr.msk.f32.mxu0 %vm234_vm2, %v3410_v0 }
 0x15a   : > { %5149 = vmatmul.mubr.msk.f32.gmra.mrb[30].mxu0 %vm234_vm2, %v3411_v3 }
 0x1cd   : > { %v4855_v5 = vpop.f32.mrb[0].mxu1 }
 0x1ce   : > { %v1628_v7 = vpop.f32.mrb[1].mxu1 }
 0x1d1   : > { %v4858_v8 = vpop.f32.mrb[2].mxu1 }
 0x1d2   : > { %v1638_v9 = vpop.f32.mrb[3].mxu1 }
 0x1d5   : > { %v4861_v10 = vpop.f32.mrb[4].mxu1 }
 0x1d6   : > { %v1648_v11 = vpop.f32.mrb[5].mxu1 }
 0x1d9   : > { %v4864_v12 = vpop.f32.mrb[6].mxu1 }
 0x1da   : > { %v1658_v13 = vpop.f32.mrb[7].mxu1 }
 0x1dd   : > { %v6502_v14 = vpop.f32.mrb[8].mxu1 }
 0x1de   : > { %v6504_v15 = vpop.f32.mrb[9].mxu1 }
 0x1e1   : > { %v6506_v16 = vpop.f32.mrb[10].mxu1 }
 0x1e2   : > { %v6508_v17 = vpop.f32.mrb[11].mxu1 }
 0x1e5   : > { %v6510_v18 = vpop.f32.mrb[12].mxu1 }
 0x1e6   : > { %v6512_v19 = vpop.f32.mrb[13].mxu1 }
 0x1e9   : > { %v6514_v20 = vpop.f32.mrb[14].mxu1 }
 0x1ea   : > { %v6516_v21 = vpop.f32.mrb[15].mxu1 }
 0x1f1   : > { %v5105_v22 = vpop.f32.mrb[0].mxu0 }
 0x1f2   : > { %v5153_v23 = vadd.f32 %v5105_v22, %v4855_v5  ;;  %v3579_v24 = vpop.f32.mrb[1].mxu0 }
 0x1f3   : > { %v5154_v25 = vadd.f32 %v3579_v24, %v1628_v7 }
 0x1f4   : > { %v3773_v27 = vsel %vm3771_vm4, %v5153_v23, 0.0  ;;  %v3846_v29 = vmul.f32 %v5153_v23, %v5153_v23  ;;  %3949 = vst.msk [vmem:[%s5550_s24 + $0x8] sm:$0xff] %vm3771_vm4, %v5153_v23 }
 0x1f5   : > { %v3772_v31 = vsel %vm3771_vm4, %v5154_v25, 0.0  ;;  %v3845_v38 = vmul.f32 %v5154_v25, %v5154_v25  ;;  %3948 = vst.msk [vmem:[%s5550_s24] sm:$0xff] %vm3771_vm4, %v5154_v25  ;;  %v5108_v39 = vpop.f32.mrb[2].mxu0 }
 0x1f6   : > { %v3878_v41 = vsel %vm3771_vm4, %v3846_v29, 0.0  ;;  %v3774_v42 = vadd.f32 %v3773_v27, %v3772_v31  ;;  %v5155_v44 = vadd.f32 %v5108_v39, %v4858_v8  ;;  %v3589_v45 = vpop.f32.mrb[3].mxu0 }
 0x1f7   : > { %v3877_v46 = vsel %vm3771_vm4, %v3845_v38, 0.0  ;;  %v5156_v47 = vadd.f32 %v3589_v45, %v1638_v9 }
 0x1f8   : > { %v3879_v50 = vadd.f32 %v3878_v41, %v3877_v46  ;;  %3951 = vst.msk [vmem:[%s5550_s24 + $0x18] sm:$0xff] %vm3771_vm4, %v5155_v44  ;;  %v3848_v57 = vmul.f32 %v5155_v44, %v5155_v44  ;;  %v3777_v32 = vsel %vm3771_vm4, %v5155_v44, 0.0 }
 0x1f9   : > { %v3775_v58 = vsel %vm3771_vm4, %v5156_v47, 0.0  ;;  %v3847_v26 = vmul.f32 %v5156_v47, %v5156_v47  ;;  %3950 = vst.msk [vmem:[%s5550_s24 + $0x10] sm:$0xff] %vm3771_vm4, %v5156_v47  ;;  %v5111_v28 = vpop.f32.mrb[4].mxu0 }
 0x1fa   : > { %v3776_v62 = vadd.f32 %v3775_v58, %v3774_v42  ;;  %v5157_v56 = vadd.f32 %v5111_v28, %v4861_v10  ;;  %v3599_v59 = vpop.f32.mrb[5].mxu0  ;;  %v3882_v51 = vsel %vm3771_vm4, %v3848_v57, 0.0 }
 0x1fb   : > { %v3880_v34 = vsel %vm3771_vm4, %v3847_v26, 0.0  ;;  %v5158_v36 = vadd.f32 %v3599_v59, %v1648_v11 }
 0x1fc   : > { %v3881_v40 = vadd.f32 %v3880_v34, %v3879_v50  ;;  %3953 = vst.msk [vmem:[%s5550_s24 + $0x28] sm:$0xff] %vm3771_vm4, %v5157_v56  ;;  %v3778_v48 = vadd.f32 %v3777_v32, %v3776_v62  ;;  %v3850_v53 = vmul.f32 %v5157_v56, %v5157_v56  ;;  %v3781_v33 = vsel %vm3771_vm4, %v5157_v56, 0.0 }
 0x1fd   : > { %v3779_v54 = vsel %vm3771_vm4, %v5158_v36, 0.0  ;;  %v3849_v4 = vmul.f32 %v5158_v36, %v5158_v36  ;;  %3952 = vst.msk [vmem:[%s5550_s24 + $0x20] sm:$0xff] %vm3771_vm4, %v5158_v36  ;;  %v5114_v6 = vpop.f32.mrb[6].mxu0 }
 0x1fe   : > { %v3780_v35 = vadd.f32 %v3779_v54, %v3778_v48  ;;  %v3883_v43 = vadd.f32 %v3882_v51, %v3881_v40  ;;  %v5159_v52 = vadd.f32 %v5114_v6, %v4864_v12  ;;  %v3609_v2 = vpop.f32.mrb[7].mxu0  ;;  %v3886_v60 = vsel %vm3771_vm4, %v3850_v53, 0.0 }
 0x1ff   : > { %v3884_v30 = vsel %vm3771_vm4, %v3849_v4, 0.0  ;;  %v5160_v37 = vadd.f32 %v3609_v2, %v1658_v13 }
 0x200   : > { %v3885_v49 = vadd.f32 %v3884_v30, %v3883_v43  ;;  %3955 = vst.msk [vmem:[%s5550_s24 + $0x38] sm:$0xff] %vm3771_vm4, %v5159_v52  ;;  %v3782_v55 = vadd.f32 %v3781_v33, %v3780_v35  ;;  %v3852_v61 = vmul.f32 %v5159_v52, %v5159_v52  ;;  %v3785_v9 = vsel %vm3771_vm4, %v5159_v52, 0.0 }
 0x201   : > { %v3783_v63 = vsel %vm3771_vm4, %v5160_v37, 0.0  ;;  %v3851_v0 = vmul.f32 %v5160_v37, %v5160_v37  ;;  %3954 = vst.msk [vmem:[%s5550_s24 + $0x30] sm:$0xff] %vm3771_vm4, %v5160_v37  ;;  %v5117_v1 = vpop.f32.mrb[8].mxu0 }
 0x202   : > { %v3784_v3 = vadd.f32 %v3783_v63, %v3782_v55  ;;  %v3887_v5 = vadd.f32 %v3886_v60, %v3885_v49  ;;  %v5161_v7 = vadd.f32 %v5117_v1, %v6502_v14  ;;  %v3619_v8 = vpop.f32.mrb[9].mxu0  ;;  %v3890_v22 = vsel %vm3771_vm4, %v3852_v61, 0.0 }
 0x203   : > { %v3888_v10 = vsel %vm3771_vm4, %v3851_v0, 0.0  ;;  %v5162_v11 = vadd.f32 %v3619_v8, %v6504_v15 }
 0x204   : > { %v3889_v12 = vadd.f32 %v3888_v10, %v3887_v5  ;;  %3957 = vst.msk [vmem:[%s5550_s24 + $0x48] sm:$0xff] %vm3771_vm4, %v5161_v7  ;;  %v3786_v13 = vadd.f32 %v3785_v9, %v3784_v3  ;;  %v3854_v23 = vmul.f32 %v5161_v7, %v5161_v7  ;;  %v3789_v38 = vsel %vm3771_vm4, %v5161_v7, 0.0 }
 0x205   : > { %v3787_v24 = vsel %vm3771_vm4, %v5162_v11, 0.0  ;;  %v3853_v25 = vmul.f32 %v5162_v11, %v5162_v11  ;;  %3956 = vst.msk [vmem:[%s5550_s24 + $0x40] sm:$0xff] %vm3771_vm4, %v5162_v11  ;;  %v5120_v14 = vpop.f32.mrb[10].mxu0 }
 0x206   : > { %v3788_v27 = vadd.f32 %v3787_v24, %v3786_v13  ;;  %v3891_v29 = vadd.f32 %v3890_v22, %v3889_v12  ;;  %v5163_v31 = vadd.f32 %v5120_v14, %v6506_v16  ;;  %v3629_v15 = vpop.f32.mrb[11].mxu0  ;;  %v3894_v45 = vsel %vm3771_vm4, %v3854_v23, 0.0 }
 0x207   : > { %v3892_v39 = vsel %vm3771_vm4, %v3853_v25, 0.0  ;;  %v5164_v41 = vadd.f32 %v3629_v15, %v6508_v17 }
 0x208   : > { %v3893_v42 = vadd.f32 %v3892_v39, %v3891_v29  ;;  %3959 = vst.msk [vmem:[%s5550_s24 + $0x58] sm:$0xff] %vm3771_vm4, %v5163_v31  ;;  %v3790_v44 = vadd.f32 %v3789_v38, %v3788_v27  ;;  %v3856_v46 = vmul.f32 %v5163_v31, %v5163_v31  ;;  %v3793_v28 = vsel %vm3771_vm4, %v5163_v31, 0.0 }
 0x209   : > { %v3791_v47 = vsel %vm3771_vm4, %v5164_v41, 0.0  ;;  %v3855_v50 = vmul.f32 %v5164_v41, %v5164_v41  ;;  %3958 = vst.msk [vmem:[%s5550_s24 + $0x50] sm:$0xff] %vm3771_vm4, %v5164_v41  ;;  %v5123_v16 = vpop.f32.mrb[12].mxu0 }
 0x20a   : > { %v3792_v57 = vadd.f32 %v3791_v47, %v3790_v44  ;;  %v3895_v58 = vadd.f32 %v3894_v45, %v3893_v42  ;;  %v5165_v26 = vadd.f32 %v5123_v16, %v6510_v18  ;;  %v3639_v17 = vpop.f32.mrb[13].mxu0  ;;  %v3898_v34 = vsel %vm3771_vm4, %v3856_v46, 0.0 }
 0x20b   : > { %v3896_v62 = vsel %vm3771_vm4, %v3855_v50, 0.0  ;;  %v5166_v56 = vadd.f32 %v3639_v17, %v6512_v19 }
 0x20c   : > { %v3897_v59 = vadd.f32 %v3896_v62, %v3895_v58  ;;  %3961 = vst.msk [vmem:[%s5550_s24 + $0x68] sm:$0xff] %vm3771_vm4, %v5165_v26  ;;  %v3794_v32 = vadd.f32 %v3793_v28, %v3792_v57  ;;  %v3858_v36 = vmul.f32 %v5165_v26, %v5165_v26  ;;  %v3797_v4 = vsel %vm3771_vm4, %v5165_v26, 0.0 }
 0x20d   : > { %v3795_v40 = vsel %vm3771_vm4, %v5166_v56, 0.0  ;;  %v3857_v48 = vmul.f32 %v5166_v56, %v5166_v56  ;;  %3960 = vst.msk [vmem:[%s5550_s24 + $0x60] sm:$0xff] %vm3771_vm4, %v5166_v56  ;;  %v5126_v18 = vpop.f32.mrb[14].mxu0  ;;  %v4929_v2 = vpop.f32.mrb[16].mxu1 }
 0x20e   : > { %v3796_v51 = vadd.f32 %v3795_v40, %v3794_v32  ;;  %v3899_v53 = vadd.f32 %v3898_v34, %v3897_v59  ;;  %v5167_v54 = vadd.f32 %v5126_v18, %v6514_v20  ;;  %v3649_v19 = vpop.f32.mrb[15].mxu0  ;;  %v3902_v33 = vsel %vm3771_vm4, %v3858_v36, 0.0  ;;  %v2098_v20 = vpop.f32.mrb[17].mxu1 }
 0x20f   : > { %v3900_v6 = vsel %vm3771_vm4, %v3857_v48, 0.0  ;;  %v5168_v35 = vadd.f32 %v3649_v19, %v6516_v21 }
 0x210   : > { %v3901_v43 = vadd.f32 %v3900_v6, %v3899_v53  ;;  %3963 = vst.msk [vmem:[%s5550_s24 + $0x78] sm:$0xff] %vm3771_vm4, %v5167_v54  ;;  %v3798_v52 = vadd.f32 %v3797_v4, %v3796_v51  ;;  %v3860_v30 = vmul.f32 %v5167_v54, %v5167_v54  ;;  %v3801_v0 = vsel %vm3771_vm4, %v5167_v54, 0.0 }
 0x211   : > { %v3799_v37 = vsel %vm3771_vm4, %v5168_v35, 0.0  ;;  %v3859_v49 = vmul.f32 %v5168_v35, %v5168_v35  ;;  %3962 = vst.msk [vmem:[%s5550_s24 + $0x70] sm:$0xff] %vm3771_vm4, %v5168_v35  ;;  %v5129_v55 = vpop.f32.mrb[16].mxu0  ;;  %v4932_v8 = vpop.f32.mrb[18].mxu1 }
 0x212   : > { %v3800_v60 = vadd.f32 %v3799_v37, %v3798_v52  ;;  %v3903_v61 = vadd.f32 %v3902_v33, %v3901_v43  ;;  %v5169_v21 = vadd.f32 %v5129_v55, %v4929_v2  ;;  %v3659_v63 = vpop.f32.mrb[17].mxu0  ;;  %v3906_v9 = vsel %vm3771_vm4, %v3860_v30, 0.0  ;;  %v2108_v13 = vpop.f32.mrb[19].mxu1 }
 0x213   : > { %v3904_v1 = vsel %vm3771_vm4, %v3859_v49, 0.0  ;;  %v5170_v3 = vadd.f32 %v3659_v63, %v2098_v20 }
 0x214   : > { %v3905_v5 = vadd.f32 %v3904_v1, %v3903_v61  ;;  %3965 = vst.msk [vmem:[%s5550_s24 + $0x88] sm:$0xff] %vm3771_vm4, %v5169_v21  ;;  %v3802_v7 = vadd.f32 %v3801_v0, %v3800_v60  ;;  %v3862_v10 = vmul.f32 %v5169_v21, %v5169_v21  ;;  %v3805_v27 = vsel %vm3771_vm4, %v5169_v21, 0.0 }
 0x215   : > { %v3803_v11 = vsel %vm3771_vm4, %v5170_v3, 0.0  ;;  %v3861_v12 = vmul.f32 %v5170_v3, %v5170_v3  ;;  %3964 = vst.msk [vmem:[%s5550_s24 + $0x80] sm:$0xff] %vm3771_vm4, %v5170_v3  ;;  %v5132_v22 = vpop.f32.mrb[18].mxu0  ;;  %v4935_v39 = vpop.f32.mrb[20].mxu1 }
 0x216   : > { %v3804_v23 = vadd.f32 %v3803_v11, %v3802_v7  ;;  %v3907_v24 = vadd.f32 %v3906_v9, %v3905_v5  ;;  %v5171_v25 = vadd.f32 %v5132_v22, %v4932_v8  ;;  %v3669_v14 = vpop.f32.mrb[19].mxu0  ;;  %v3910_v41 = vsel %vm3771_vm4, %v3862_v10, 0.0  ;;  %v2118_v46 = vpop.f32.mrb[21].mxu1 }
 0x217   : > { %v3908_v29 = vsel %vm3771_vm4, %v3861_v12, 0.0  ;;  %v5172_v31 = vadd.f32 %v3669_v14, %v2108_v13 }
 0x218   : > { %v3909_v15 = vadd.f32 %v3908_v29, %v3907_v24  ;;  %3967 = vst.msk [vmem:[%s5550_s24 + $0x98] sm:$0xff] %vm3771_vm4, %v5171_v25  ;;  %v3806_v38 = vadd.f32 %v3805_v27, %v3804_v23  ;;  %v3864_v42 = vmul.f32 %v5171_v25, %v5171_v25  ;;  %v3809_v26 = vsel %vm3771_vm4, %v5171_v25, 0.0 }
 0x219   : > { %v3807_v44 = vsel %vm3771_vm4, %v5172_v31, 0.0  ;;  %v3863_v45 = vmul.f32 %v5172_v31, %v5172_v31  ;;  %3966 = vst.msk [vmem:[%s5550_s24 + $0x90] sm:$0xff] %vm3771_vm4, %v5172_v31  ;;  %v5135_v47 = vpop.f32.mrb[20].mxu0  ;;  %v4938_v59 = vpop.f32.mrb[22].mxu1 }
 0x21a   : > { %v3808_v50 = vadd.f32 %v3807_v44, %v3806_v38  ;;  %v3911_v16 = vadd.f32 %v3910_v41, %v3909_v15  ;;  %v5173_v57 = vadd.f32 %v5135_v47, %v4935_v39  ;;  %v3679_v58 = vpop.f32.mrb[21].mxu0  ;;  %v3914_v32 = vsel %vm3771_vm4, %v3864_v42, 0.0  ;;  %v2128_v48 = vpop.f32.mrb[23].mxu1 }
 0x21b   : > { %v3912_v17 = vsel %vm3771_vm4, %v3863_v45, 0.0  ;;  %v5174_v28 = vadd.f32 %v3679_v58, %v2118_v46 }
 0x21c   : > { %v3913_v62 = vadd.f32 %v3912_v17, %v3911_v16  ;;  %3969 = vst.msk [vmem:[%s5550_s24 + $0xa8] sm:$0xff] %vm3771_vm4, %v5173_v57  ;;  %v3810_v56 = vadd.f32 %v3809_v26, %v3808_v50  ;;  %v3866_v34 = vmul.f32 %v5173_v57, %v5173_v57  ;;  %v3813_v4 = vsel %vm3771_vm4, %v5173_v57, 0.0 }
 0x21d   : > { %v3811_v36 = vsel %vm3771_vm4, %v5174_v28, 0.0  ;;  %v3865_v40 = vmul.f32 %v5174_v28, %v5174_v28  ;;  %3968 = vst.msk [vmem:[%s5550_s24 + $0xa0] sm:$0xff] %vm3771_vm4, %v5174_v28  ;;  %v5138_v18 = vpop.f32.mrb[22].mxu0  ;;  %v4941_v2 = vpop.f32.mrb[24].mxu1 }
 0x21e   : > { %v3812_v51 = vadd.f32 %v3811_v36, %v3810_v56  ;;  %v3915_v53 = vadd.f32 %v3914_v32, %v3913_v62  ;;  %v5175_v54 = vadd.f32 %v5138_v18, %v4938_v59  ;;  %v3689_v19 = vpop.f32.mrb[23].mxu0  ;;  %v3918_v33 = vsel %vm3771_vm4, %v3866_v34, 0.0  ;;  %v2138_v20 = vpop.f32.mrb[25].mxu1 }
 0x21f   : > { %v3916_v6 = vsel %vm3771_vm4, %v3865_v40, 0.0  ;;  %v5176_v35 = vadd.f32 %v3689_v19, %v2128_v48 }
 0x220   : > { %v3917_v43 = vadd.f32 %v3916_v6, %v3915_v53  ;;  %3971 = vst.msk [vmem:[%s5550_s24 + $0xb8] sm:$0xff] %vm3771_vm4, %v5175_v54  ;;  %v3814_v52 = vadd.f32 %v3813_v4, %v3812_v51  ;;  %v3868_v30 = vmul.f32 %v5175_v54, %v5175_v54  ;;  %v3817_v0 = vsel %vm3771_vm4, %v5175_v54, 0.0 }
 0x221   : > { %v3815_v37 = vsel %vm3771_vm4, %v5176_v35, 0.0  ;;  %v3867_v49 = vmul.f32 %v5176_v35, %v5176_v35  ;;  %3970 = vst.msk [vmem:[%s5550_s24 + $0xb0] sm:$0xff] %vm3771_vm4, %v5176_v35  ;;  %v5141_v55 = vpop.f32.mrb[24].mxu0  ;;  %v4944_v8 = vpop.f32.mrb[26].mxu1 }
 0x222   : > { %v3816_v60 = vadd.f32 %v3815_v37, %v3814_v52  ;;  %v3919_v61 = vadd.f32 %v3918_v33, %v3917_v43  ;;  %v5177_v21 = vadd.f32 %v5141_v55, %v4941_v2  ;;  %v3699_v63 = vpop.f32.mrb[25].mxu0  ;;  %v3922_v9 = vsel %vm3771_vm4, %v3868_v30, 0.0  ;;  %v2148_v13 = vpop.f32.mrb[27].mxu1 }
 0x223   : > { %v3920_v1 = vsel %vm3771_vm4, %v3867_v49, 0.0  ;;  %v5178_v3 = vadd.f32 %v3699_v63, %v2138_v20 }
 0x224   : > { %v3921_v5 = vadd.f32 %v3920_v1, %v3919_v61  ;;  %3973 = vst.msk [vmem:[%s5550_s24 + $0xc8] sm:$0xff] %vm3771_vm4, %v5177_v21  ;;  %v3818_v7 = vadd.f32 %v3817_v0, %v3816_v60  ;;  %v3870_v10 = vmul.f32 %v5177_v21, %v5177_v21  ;;  %v3821_v27 = vsel %vm3771_vm4, %v5177_v21, 0.0 }
 0x225   : > { %v3819_v11 = vsel %vm3771_vm4, %v5178_v3, 0.0  ;;  %v3869_v12 = vmul.f32 %v5178_v3, %v5178_v3  ;;  %3972 = vst.msk [vmem:[%s5550_s24 + $0xc0] sm:$0xff] %vm3771_vm4, %v5178_v3  ;;  %v5144_v22 = vpop.f32.mrb[26].mxu0  ;;  %v4947_v39 = vpop.f32.mrb[28].mxu1 }
 0x226   : > { %v3820_v23 = vadd.f32 %v3819_v11, %v3818_v7  ;;  %v3923_v24 = vadd.f32 %v3922_v9, %v3921_v5  ;;  %v5179_v25 = vadd.f32 %v5144_v22, %v4944_v8  ;;  %v3709_v14 = vpop.f32.mrb[27].mxu0  ;;  %v3926_v41 = vsel %vm3771_vm4, %v3870_v10, 0.0  ;;  %v2158_v46 = vpop.f32.mrb[29].mxu1 }
 0x227   : > { %v3924_v29 = vsel %vm3771_vm4, %v3869_v12, 0.0  ;;  %v5180_v31 = vadd.f32 %v3709_v14, %v2148_v13  ;;  %v3770_v13 = vld [vmem:[#allocation3] sm:$0x1] }
 0x228   : > { %v3925_v15 = vadd.f32 %v3924_v29, %v3923_v24  ;;  %3975 = vst.msk [vmem:[%s5550_s24 + $0xd8] sm:$0xff] %vm3771_vm4, %v5179_v25  ;;  %v3822_v38 = vadd.f32 %v3821_v27, %v3820_v23  ;;  %v3872_v42 = vmul.f32 %v5179_v25, %v5179_v25  ;;  %v3825_v26 = vsel %vm3771_vm4, %v5179_v25, 0.0  ;;  %v3844_v24 = vld [vmem:[#allocation5] sm:$0x1] }
 0x229   : > { %v3823_v44 = vsel %vm3771_vm4, %v5180_v31, 0.0  ;;  %v3871_v45 = vmul.f32 %v5180_v31, %v5180_v31  ;;  %3974 = vst.msk [vmem:[%s5550_s24 + $0xd0] sm:$0xff] %vm3771_vm4, %v5180_v31  ;;  %v5147_v47 = vpop.f32.mrb[28].mxu0  ;;  %v4950_v59 = vpop.f32.mrb[30].mxu1 }
 0x22a   : > { %v3824_v50 = vadd.f32 %v3823_v44, %v3822_v38  ;;  %v3927_v16 = vadd.f32 %v3926_v41, %v3925_v15  ;;  %v5181_v57 = vadd.f32 %v5147_v47, %v4947_v39  ;;  %v3719_v58 = vpop.f32.mrb[29].mxu0  ;;  %v3930_v32 = vsel %vm3771_vm4, %v3872_v42, 0.0  ;;  %v2168_v48 = vpop.f32.mrb[31].mxu1 }
 0x22b   : > { %v3928_v17 = vsel %vm3771_vm4, %v3871_v45, 0.0  ;;  %v5182_v28 = vadd.f32 %v3719_v58, %v2158_v46 }
 0x22c   : > { %v3929_v62 = vadd.f32 %v3928_v17, %v3927_v16  ;;  %3977 = vst.msk [vmem:[%s5550_s24 + $0xe8] sm:$0xff] %vm3771_vm4, %v5181_v57  ;;  %v3826_v56 = vadd.f32 %v3825_v26, %v3824_v50  ;;  %v3874_v34 = vmul.f32 %v5181_v57, %v5181_v57  ;;  %v3829_v4 = vsel %vm3771_vm4, %v5181_v57, 0.0 }
 0x22d   : > { %v3827_v36 = vsel %vm3771_vm4, %v5182_v28, 0.0  ;;  %v3873_v40 = vmul.f32 %v5182_v28, %v5182_v28  ;;  %3976 = vst.msk [vmem:[%s5550_s24 + $0xe0] sm:$0xff] %vm3771_vm4, %v5182_v28  ;;  %v5150_v18 = vpop.f32.mrb[30].mxu0 }
 0x22e   : > { %v3828_v51 = vadd.f32 %v3827_v36, %v3826_v56  ;;  %v3931_v53 = vadd.f32 %v3930_v32, %v3929_v62  ;;  %v5183_v54 = vadd.f32 %v5150_v18, %v4950_v59  ;;  %v3729_v19 = vpop.f32.mrb[31].mxu0  ;;  %v3934_v33 = vsel %vm3771_vm4, %v3874_v34, 0.0 }
 0x22f   : > { %v3932_v6 = vsel %vm3771_vm4, %v3873_v40, 0.0  ;;  %v5184_v35 = vadd.f32 %v3729_v19, %v2168_v48 }
 0x230   : > { %v3933_v43 = vadd.f32 %v3932_v6, %v3931_v53  ;;  %v3876_v52 = vmul.f32 %v5183_v54, %v5183_v54  ;;  %3979 = vst.msk [vmem:[%s5550_s24 + $0xf8] sm:$0xff] %vm3771_vm4, %v5183_v54  ;;  %v3830_v2 = vadd.f32 %v3829_v4, %v3828_v51  ;;  %v3833_v60 = vsel %vm3771_vm4, %v5183_v54, 0.0 }
 0x231   : > { %v3831_v30 = vsel %vm3771_vm4, %v5184_v35, 0.0  ;;  %v3875_v37 = vmul.f32 %v5184_v35, %v5184_v35  ;;  %3978 = vst.msk [vmem:[%s5550_s24 + $0xf0] sm:$0xff] %vm3771_vm4, %v5184_v35  ;;  %s5439_s24 = scalar_lea.vmem %s3996_s20, 32 }
 0x232   : > { %v3938_v49 = vsel %vm3771_vm4, %v3876_v52, 0.0  ;;  %v3832_v20 = vadd.f32 %v3831_v30, %v3830_v2  ;;  %v3935_v55 = vadd.f32 %v3934_v33, %v3933_v43  ;;  %p5441_p10 = scmp.lt.s32.totalorder %s5439_s24, %s5433_s23 }
 0x233   : > { %v3936_v61 = vsel %vm3771_vm4, %v3875_v37, 0.0 }
 0x234   : > { %v3834_v21 = vadd.f32 %v3833_v60, %v3832_v20  ;;  %v3937_v63 = vadd.f32 %v3936_v61, %v3935_v55  ;;  %p5442_p11 = por %p5441_p10, %p5440_p9 }
 0x236   : > { %v3835_v0 = vrot.slane %v3834_v21, 4  ;;  %v3939_v1 = vadd.f32 %v3938_v49, %v3937_v63  ;;  %p5443_p12 = pnand %p5442_p11, %p5436_p8 }
 0x238   : > { %v3836_v3 = vadd.f32 %v3835_v0, %v3834_v21  ;;  %v3940_v5 = vrot.slane %v3939_v1, 4 }
 0x23a   : > { %v3837_v7 = vrot.slane %v3836_v3, 2  ;;  %v3941_v8 = vadd.f32 %v3940_v5, %v3939_v1 }
 0x23c   : > { %v3838_v9 = vadd.f32 %v3837_v7, %v3836_v3  ;;  %v3942_v10 = vrot.slane %v3941_v8, 2 }
 0x23e   : > { %v3839_v11 = vrot.slane %v3838_v9, 1  ;;  %v3943_v12 = vadd.f32 %v3942_v10, %v3941_v8 }
 0x240   : > { %v3840_v22 = vadd.f32 %v3839_v11, %v3838_v9  ;;  %v3944_v23 = vrot.slane %v3943_v12, 1 }
 0x242   : > { %v3841_v25 = vadd.f32 %v3840_v22, %v3770_v13  ;;  %v3945_v14 = vadd.f32 %v3944_v23, %v3943_v12 }
 0x244   : > { %3843 = vst.msk [vmem:[#allocation3] sm:$0x1] %vm3842_vm5, %v3841_v25  ;;  %v3946_v27 = vadd.f32 %v3945_v14, %v3844_v24 }
 0x245   : > { %5446 = shalt.err (!%p5443_p12)
}
 0x246   : > { %s5447_s27 = scalar_lea.hbm %s6715_s3, 16 }
 0x247   : > { %p5448_p13 = scmp.ne.s32.totalorder %s6715_s3, %s5447_s27  ;;  %p5453_p2 = scmp.lt.u32.totalorder %s5447_s27, %s6715_s3 }
 0x249   : > { %p5449_p0 = pnand %p5448_p13, %p5417_p5 }
 0x24b   : > { %p5450_p1 = pneg %p5449_p0 }
 0x24d   : > { %p5455_p3 = pnand %p5453_p2, %p5450_p1 }
 0x24f   : > { %5458 = shalt.err (!%p5455_p3)
}
 0x250   : > { %5410 = dma.vmem_to_hbm [thread:$0]  (%p5417_p5), %s3996_s20, 16, %s6715_s3, [#allocation4]   ;;  %3947 = vst.msk [vmem:[#allocation5] sm:$0x1] %vm3842_vm5, %v3946_v27 }
 0x251   : > { %s5459_s8 = scalar_lea.vmem %s6656_s22, 16  ;;  %s5465_s9 = scalar_lea.vmem %s6656_s22, 32 }
 0x252   : > { %p5460_p4 = scmp.ne.s32.totalorder %s6656_s22, %s5459_s8  ;;  %p5466_p8 = scmp.lt.s32.totalorder %s6656_s22, %s6656_s22 }
 0x253   : > { %p5467_p9 = scmp.lt.s32.totalorder %s5465_s9, %s5459_s8 }
 0x254   : > { %p5461_p6 = pnand %p5460_p4, %p5417_p5 }
 0x255   : > { %p5468_p10 = por %p5467_p9, %p5466_p8 }
 0x256   : > { %p5462_p7 = pneg %p5461_p6 }
 0x258   : > { %p5469_p11 = pnand %p5468_p10, %p5462_p7 }
 0x25a   : > { %5472 = shalt.err (!%p5469_p11)
}
 0x25b   : > { %s5473_s12 = scalar_lea.hbm %s6716_s4, 16 }
 0x25c   : > { %p5474_p12 = scmp.ne.s32.totalorder %s6716_s4, %s5473_s12  ;;  %p5479_p1 = scmp.lt.u32.totalorder %s5473_s12, %s6716_s4 }
 0x25e   : > { %p5475_p13 = pnand %p5474_p12, %p5417_p5 }
 0x260   : > { %p5476_p0 = pneg %p5475_p13 }
 0x262   : > { %p5481_p2 = pnand %p5479_p1, %p5476_p0 }
 0x264   : > { %5484 = shalt.err (!%p5481_p2)
}
 0x265   : > { %5412 = dma.vmem_to_hbm [thread:$0]  (%p5417_p5), %s6656_s22, 16, %s6716_s4, [#allocation6]  }
 0x266   : > { %5490 = dma.done.wait (%p5417_p5), [#allocation4], 16  }
 0x267   : > { %5492 = vsyncadd (%p5417_p5), [#allocation4], 4294967280 }
 0x268   : > { %5494 = dma.done.wait (%p5417_p5), [#allocation6], 16  }
 0x269   : > { %5496 = vsyncadd (%p5417_p5), [#allocation6], 4294967280 }
 0x26a PF: > { %s17_s15 = sadd.s32 1, %s5499_s15  }
 0x26b   : > { %p14_p3 = scmp.ge.s32.totalorder %s17_s15, 4  }
 0x26d   :  { %16 = sbr.rel (!%p14_p3) target bundleno = 2 (0x2), region = 89 }
 0x274   :  { %4031 = vsyncpa [#allocation4], 1 }
 0x275   :  { %4033 = vsyncpa [#allocation4 + $0x1], 1 }
 0x276   :  { %4034 = vsyncpa [#allocation6], 1 }

</bundles_post_ra>
